<compile_context>
chip_gen: v5e
topology: v5e:2x2
jax: 0.10.0
libtpu: 0.0.40
codegen_flags: <defaults>
</compile_context>

<pallas_src>
import functools
import math

import jax
import jax.numpy as jnp
from jax.experimental import pallas as pl
from jax.experimental.pallas import tpu as pltpu

D_MODEL = 32
N_HEADS = 4
D_FF = 64
EPS = 1e-5          # LayerNorm eps (nn.LayerNorm default)
NEG_INF = -1e9


# ----------------------------- in-kernel helpers -----------------------------
def _layer_norm(x, g, b):
    mean = jnp.mean(x, axis=-1, keepdims=True)
    var = jnp.mean(jnp.square(x - mean), axis=-1, keepdims=True)
    return (x - mean) * jax.lax.rsqrt(var + EPS) * g + b


def _attention(x_q, x_kv, keep, wq, bq, wk, bk, wv, bv, wo, bo, n_heads):
    """Multi-head attention on flattened (B*S, D) activations.

    - 1/sqrt(d_head) is pre-folded into (wq, bq).
    - `keep` is a (Nq, Nk) boolean block-diagonal mask (already hoisted).
    - Head outputs accumulate through the matching rows of Wo (no concat).
    """
    D = x_q.shape[-1]
    dh = D // n_heads

    q = jnp.dot(x_q, wq, preferred_element_type=jnp.float32) + bq
    k = jnp.dot(x_kv, wk, preferred_element_type=jnp.float32) + bk
    v = jnp.dot(x_kv, wv, preferred_element_type=jnp.float32) + bv

    out = None
    for h in range(n_heads):                            # static loop over heads
        hs, he = h * dh, (h + 1) * dh
        s = jnp.dot(q[:, hs:he], k[:, hs:he].T, preferred_element_type=jnp.float32)
        s = jnp.where(keep, s, NEG_INF)
        s = s - jnp.max(s, axis=-1, keepdims=True)
        p = jnp.exp(s)
        # EUP reciprocal instead of a VALU divide.
        p = p * pl.reciprocal(jnp.sum(p, axis=-1, keepdims=True), approx=True)
        oh = jnp.dot(p, v[:, hs:he], preferred_element_type=jnp.float32)
        c = jnp.dot(oh, wo[hs:he, :], preferred_element_type=jnp.float32)
        out = c if out is None else out + c
    return out + bo


# ------------------------ fused decoder-layer kernel -------------------------
def _decoder_layer_kernel(
    x_ref, mem_ref, tgt_mask_ref, src_mask_ref,
    ln1_g_ref, ln1_b_ref, ln2_g_ref, ln2_b_ref, ln3_g_ref, ln3_b_ref,
    sa_wq_ref, sa_bq_ref, sa_wk_ref, sa_bk_ref, sa_wv_ref, sa_bv_ref, sa_wo_ref, sa_bo_ref,
    ca_wq_ref, ca_bq_ref, ca_wk_ref, ca_bk_ref, ca_wv_ref, ca_bv_ref, ca_wo_ref, ca_bo_ref,
    ff_w1_ref, ff_b1_ref, ff_w2_ref, ff_b2_ref,
    o_ref, *, n_heads):
    x = x_ref[...]                                      # (B*S, D)
    mem = mem_ref[...]                                  # (B*Sm, D)
    tgt_keep = tgt_mask_ref[...] > 0.5                  # hoisted, reused by all heads
    src_keep = src_mask_ref[...] > 0.5

    # --- self-attention block (dropout1 = identity) ---
    x1 = _layer_norm(x, ln1_g_ref[...], ln1_b_ref[...])
    x = x + _attention(x1, x1, tgt_keep,
                       sa_wq_ref[...], sa_bq_ref[...], sa_wk_ref[...], sa_bk_ref[...],
                       sa_wv_ref[...], sa_bv_ref[...], sa_wo_ref[...], sa_bo_ref[...],
                       n_heads)

    # --- cross-attention block (dropout2 = identity) ---
    x2 = _layer_norm(x, ln2_g_ref[...], ln2_b_ref[...])
    x = x + _attention(x2, mem, src_keep,
                       ca_wq_ref[...], ca_bq_ref[...], ca_wk_ref[...], ca_bk_ref[...],
                       ca_wv_ref[...], ca_bv_ref[...], ca_wo_ref[...], ca_bo_ref[...],
                       n_heads)

    # --- feed-forward block (dropout3 = identity) ---
    x3 = _layer_norm(x, ln3_g_ref[...], ln3_b_ref[...])
    hdn = jnp.dot(x3, ff_w1_ref[...], preferred_element_type=jnp.float32) + ff_b1_ref[...]
    hdn = jnp.maximum(hdn, 0.0)                         # ReLU
    x = x + jnp.dot(hdn, ff_w2_ref[...], preferred_element_type=jnp.float32) + ff_b2_ref[...]

    o_ref[...] = x.astype(o_ref.dtype)


def transformer_decoder_layer(x, memory, src_mask, tgt_mask, params, n_heads=N_HEADS):
    """params must already have the attention scale folded (prepare_decoder_params)."""
    B, S, D = x.shape
    Sm = memory.shape[1]
    x2d = x.reshape(B * S, D)                           # free, row-major contiguous
    mem2d = memory.reshape(B * Sm, D)

    # Block-diagonal masks encode batch separation in the flattened layout.
    eye = jnp.eye(B, dtype=jnp.float32)
    tgt_big = jnp.kron(eye, tgt_mask.astype(jnp.float32))   # (B*S,  B*S)
    src_big = jnp.kron(eye, src_mask.astype(jnp.float32))   # (B*S,  B*Sm)

    sa, ca, ff = params["self_attn"], params["cross_attn"], params["ff"]
    kern = functools.partial(_decoder_layer_kernel, n_heads=n_heads)
    out2d = pl.pallas_call(
        kern,
        out_shape=jax.ShapeDtypeStruct((B * S, D), x.dtype),
        # Single fused invocation, no grid: whole problem lives in VMEM and
        # weights are loaded exactly once.
        compiler_params=pltpu.CompilerParams(vmem_limit_bytes=32 * 1024 * 1024),
    )(
        x2d, mem2d, tgt_big, src_big,
        params["ln1_g"], params["ln1_b"],
        params["ln2_g"], params["ln2_b"],
        params["ln3_g"], params["ln3_b"],
        sa["wq"], sa["bq"], sa["wk"], sa["bk"], sa["wv"], sa["bv"], sa["wo"], sa["bo"],
        ca["wq"], ca["bq"], ca["wk"], ca["bk"], ca["wv"], ca["bv"], ca["wo"], ca["bo"],
        ff["w1"], ff["b1"], ff["w2"], ff["b2"],
    )
    return out2d.reshape(B, S, D)


# ------------------------ one-time parameter transform ------------------------
def prepare_decoder_params(params, n_heads):
    """Fold the 1/sqrt(d_head) query scale into Wq / bq (init-time, not per call)."""
    def fold(ap):
        dh = ap["wq"].shape[1] // n_heads
        s = jnp.float32(1.0 / math.sqrt(dh))
        f = dict(ap)
        f["wq"] = ap["wq"] * s
        f["bq"] = ap["bq"] * s
        return f
    out = dict(params)
    out["self_attn"] = fold(params["self_attn"])
    out["cross_attn"] = fold(params["cross_attn"])
    return out


# --------------------------- Pure-JAX reference -------------------------------
def _ref_ln(x, g, b):
    m = jnp.mean(x, axis=-1, keepdims=True)
    v = jnp.mean((x - m) ** 2, axis=-1, keepdims=True)
    return (x - m) * jax.lax.rsqrt(v + EPS) * g + b


def _ref_mha(xq, xkv, mask, p, n_heads):
    B, Sq, D = xq.shape
    Sk = xkv.shape[1]
    dh = D // n_heads
    q = (xq @ p["wq"] + p["bq"]).reshape(B, Sq, n_heads, dh).transpose(0, 2, 1, 3)
    k = (xkv @ p["wk"] + p["bk"]).reshape(B, Sk, n_heads, dh).transpose(0, 2, 1, 3)
    v = (xkv @ p["wv"] + p["bv"]).reshape(B, Sk, n_heads, dh).transpose(0, 2, 1, 3)
    s = q @ k.transpose(0, 1, 3, 2) / math.sqrt(dh)
    s = jnp.where(mask[None, None] > 0.5, s, NEG_INF)
    a = jax.nn.softmax(s, axis=-1)
    o = (a @ v).transpose(0, 2, 1, 3).reshape(B, Sq, D)
    return o @ p["wo"] + p["bo"]


def _ref_decoder(x, memory, src_mask, tgt_mask, params):
    x1 = _ref_ln(x, params["ln1_g"], params["ln1_b"])
    x = x + _ref_mha(x1, x1, tgt_mask, params["self_attn"], N_HEADS)
    x2 = _ref_ln(x, params["ln2_g"], params["ln2_b"])
    x = x + _ref_mha(x2, memory, src_mask, params["cross_attn"], N_HEADS)
    x3 = _ref_ln(x, params["ln3_g"], params["ln3_b"])
    h = jnp.maximum(x3 @ params["ff"]["w1"] + params["ff"]["b1"], 0.0)
    return x + (h @ params["ff"]["w2"] + params["ff"]["b2"])


# --------------------------------- Params -------------------------------------
def init_params(key, d_model, d_ff):
    ks = jax.random.split(key, 16)

    def lin(k, din, dout):
        w = jax.random.normal(k, (din, dout), jnp.float32) / math.sqrt(din)
        b = jnp.zeros((1, dout), jnp.float32)
        return w, b

    def attn_params(k4):
        wq, bq = lin(k4[0], d_model, d_model)
        wk, bk = lin(k4[1], d_model, d_model)
        wv, bv = lin(k4[2], d_model, d_model)
        wo, bo = lin(k4[3], d_model, d_model)
        return dict(wq=wq, bq=bq, wk=wk, bk=bk, wv=wv, bv=bv, wo=wo, bo=bo)

    w1, b1 = lin(ks[8], d_model, d_ff)
    w2, b2 = lin(ks[9], d_ff, d_model)
    ones = jnp.ones((1, d_model), jnp.float32)
    zeros = jnp.zeros((1, d_model), jnp.float32)
    return dict(
        self_attn=attn_params(ks[0:4]),
        cross_attn=attn_params(ks[4:8]),
        ff=dict(w1=w1, b1=b1, w2=w2, b2=b2),
        ln1_g=ones, ln1_b=zeros,
        ln2_g=ones, ln2_b=zeros,
        ln3_g=ones, ln3_b=zeros,
    )


# ---------------------------------- Main ---------------------------------------
if __name__ == "__main__":
    B, S, S_MEM = 2, 8, 8
    key = jax.random.PRNGKey(0)
    k_x, k_mem, k_p = jax.random.split(key, 3)

    x = jax.random.normal(k_x, (B, S, D_MODEL), jnp.float32)
    memory = jax.random.normal(k_mem, (B, S_MEM, D_MODEL), jnp.float32)
    params = init_params(k_p, D_MODEL, D_FF)
    kparams = prepare_decoder_params(params, N_HEADS)   # one-time transform for kernel

    tgt_mask = jnp.tril(jnp.ones((S, S), jnp.float32))        # causal mask
    src_mask = jnp.ones((S, S_MEM), jnp.float32)              # src_mask=None -> all-ones

    out = transformer_decoder_layer(x, memory, src_mask, tgt_mask, kparams)
    out = jax.block_until_ready(out)

    ref = _ref_decoder(x, memory, src_mask, tgt_mask, params)
    assert out.shape == (B, S, D_MODEL)
    max_err = float(jnp.max(jnp.abs(out - ref)))
    # Tolerance accounts for the approximate EUP reciprocal in the softmax.
    assert jnp.allclose(out, ref, atol=1e-2, rtol=1e-2), f"mismatch vs reference (max abs err {max_err})"
    print("KERNEL_OK")
</pallas_src>

<mosaic_0001>
module attributes {stable_mosaic.version = 11 : i64} {
  func.func @_decoder_layer_kernel(%arg0: memref<16x32xf32, #tpu.memory_space<vmem>>, %arg1: memref<16x32xf32, #tpu.memory_space<vmem>>, %arg2: memref<16x16xf32, #tpu.memory_space<vmem>>, %arg3: memref<16x16xf32, #tpu.memory_space<vmem>>, %arg4: memref<1x32xf32, #tpu.memory_space<vmem>>, %arg5: memref<1x32xf32, #tpu.memory_space<vmem>>, %arg6: memref<1x32xf32, #tpu.memory_space<vmem>>, %arg7: memref<1x32xf32, #tpu.memory_space<vmem>>, %arg8: memref<1x32xf32, #tpu.memory_space<vmem>>, %arg9: memref<1x32xf32, #tpu.memory_space<vmem>>, %arg10: memref<32x32xf32, #tpu.memory_space<vmem>>, %arg11: memref<1x32xf32, #tpu.memory_space<vmem>>, %arg12: memref<32x32xf32, #tpu.memory_space<vmem>>, %arg13: memref<1x32xf32, #tpu.memory_space<vmem>>, %arg14: memref<32x32xf32, #tpu.memory_space<vmem>>, %arg15: memref<1x32xf32, #tpu.memory_space<vmem>>, %arg16: memref<32x32xf32, #tpu.memory_space<vmem>>, %arg17: memref<1x32xf32, #tpu.memory_space<vmem>>, %arg18: memref<32x32xf32, #tpu.memory_space<vmem>>, %arg19: memref<1x32xf32, #tpu.memory_space<vmem>>, %arg20: memref<32x32xf32, #tpu.memory_space<vmem>>, %arg21: memref<1x32xf32, #tpu.memory_space<vmem>>, %arg22: memref<32x32xf32, #tpu.memory_space<vmem>>, %arg23: memref<1x32xf32, #tpu.memory_space<vmem>>, %arg24: memref<32x32xf32, #tpu.memory_space<vmem>>, %arg25: memref<1x32xf32, #tpu.memory_space<vmem>>, %arg26: memref<32x64xf32, #tpu.memory_space<vmem>>, %arg27: memref<1x64xf32, #tpu.memory_space<vmem>>, %arg28: memref<64x32xf32, #tpu.memory_space<vmem>>, %arg29: memref<1x32xf32, #tpu.memory_space<vmem>>, %arg30: memref<16x32xf32, #tpu.memory_space<vmem>>) attributes {dimension_semantics = [], scalar_prefetch = 0 : i64, scratch_operands = 0 : i64, tpu.core_type = #tpu.core_type<tc>} {
    %c0 = arith.constant 0 : index
    %c0_0 = arith.constant 0 : index
    %0 = vector.load %arg0[%c0, %c0_0] : memref<16x32xf32, #tpu.memory_space<vmem>>, vector<16x32xf32>
    %c0_1 = arith.constant 0 : index
    %c0_2 = arith.constant 0 : index
    %1 = vector.load %arg1[%c0_1, %c0_2] : memref<16x32xf32, #tpu.memory_space<vmem>>, vector<16x32xf32>
    %c0_3 = arith.constant 0 : index
    %c0_4 = arith.constant 0 : index
    %2 = vector.load %arg2[%c0_3, %c0_4] : memref<16x16xf32, #tpu.memory_space<vmem>>, vector<16x16xf32>
    %cst = arith.constant 5.000000e-01 : f32
    %3 = vector.broadcast %cst : f32 to vector<16x16xf32>
    %4 = arith.cmpf ogt, %2, %3 : vector<16x16xf32>
    %c0_5 = arith.constant 0 : index
    %c0_6 = arith.constant 0 : index
    %5 = vector.load %arg3[%c0_5, %c0_6] : memref<16x16xf32, #tpu.memory_space<vmem>>, vector<16x16xf32>
    %cst_7 = arith.constant 5.000000e-01 : f32
    %6 = vector.broadcast %cst_7 : f32 to vector<16x16xf32>
    %7 = arith.cmpf ogt, %5, %6 : vector<16x16xf32>
    %c0_8 = arith.constant 0 : index
    %c0_9 = arith.constant 0 : index
    %8 = vector.load %arg4[%c0_8, %c0_9] : memref<1x32xf32, #tpu.memory_space<vmem>>, vector<1x32xf32>
    %c0_10 = arith.constant 0 : index
    %c0_11 = arith.constant 0 : index
    %9 = vector.load %arg5[%c0_10, %c0_11] : memref<1x32xf32, #tpu.memory_space<vmem>>, vector<1x32xf32>
    %cst_12 = arith.constant dense<0.000000e+00> : vector<16xf32>
    %10 = vector.multi_reduction <add>, %0, %cst_12 [1] : vector<16x32xf32> to vector<16xf32>
    %11 = vector.shape_cast %10 : vector<16xf32> to vector<16x1xf32>
    %cst_13 = arith.constant 3.200000e+01 : f32
    %12 = vector.broadcast %cst_13 : f32 to vector<16x1xf32>
    %13 = arith.divf %11, %12 : vector<16x1xf32>
    %14 = vector.broadcast %13 : vector<16x1xf32> to vector<16x32xf32>
    %15 = arith.subf %0, %14 : vector<16x32xf32>
    %16 = arith.mulf %15, %15 : vector<16x32xf32>
    %cst_14 = arith.constant dense<0.000000e+00> : vector<16xf32>
    %17 = vector.multi_reduction <add>, %16, %cst_14 [1] : vector<16x32xf32> to vector<16xf32>
    %18 = vector.shape_cast %17 : vector<16xf32> to vector<16x1xf32>
    %cst_15 = arith.constant 3.200000e+01 : f32
    %19 = vector.broadcast %cst_15 : f32 to vector<16x1xf32>
    %20 = arith.divf %18, %19 : vector<16x1xf32>
    %21 = vector.broadcast %13 : vector<16x1xf32> to vector<16x32xf32>
    %22 = arith.subf %0, %21 : vector<16x32xf32>
    %cst_16 = arith.constant 9.99999974E-6 : f32
    %23 = vector.broadcast %cst_16 : f32 to vector<16x1xf32>
    %24 = arith.addf %20, %23 : vector<16x1xf32>
    %25 = math.rsqrt %24 : vector<16x1xf32>
    %26 = vector.broadcast %25 : vector<16x1xf32> to vector<16x32xf32>
    %27 = arith.mulf %22, %26 : vector<16x32xf32>
    %28 = vector.broadcast %8 : vector<1x32xf32> to vector<16x32xf32>
    %29 = arith.mulf %27, %28 : vector<16x32xf32>
    %30 = vector.broadcast %9 : vector<1x32xf32> to vector<16x32xf32>
    %31 = arith.addf %29, %30 : vector<16x32xf32>
    %c0_17 = arith.constant 0 : index
    %c0_18 = arith.constant 0 : index
    %32 = vector.load %arg10[%c0_17, %c0_18] : memref<32x32xf32, #tpu.memory_space<vmem>>, vector<32x32xf32>
    %c0_19 = arith.constant 0 : index
    %c0_20 = arith.constant 0 : index
    %33 = vector.load %arg11[%c0_19, %c0_20] : memref<1x32xf32, #tpu.memory_space<vmem>>, vector<1x32xf32>
    %c0_21 = arith.constant 0 : index
    %c0_22 = arith.constant 0 : index
    %34 = vector.load %arg12[%c0_21, %c0_22] : memref<32x32xf32, #tpu.memory_space<vmem>>, vector<32x32xf32>
    %c0_23 = arith.constant 0 : index
    %c0_24 = arith.constant 0 : index
    %35 = vector.load %arg13[%c0_23, %c0_24] : memref<1x32xf32, #tpu.memory_space<vmem>>, vector<1x32xf32>
    %c0_25 = arith.constant 0 : index
    %c0_26 = arith.constant 0 : index
    %36 = vector.load %arg14[%c0_25, %c0_26] : memref<32x32xf32, #tpu.memory_space<vmem>>, vector<32x32xf32>
    %c0_27 = arith.constant 0 : index
    %c0_28 = arith.constant 0 : index
    %37 = vector.load %arg15[%c0_27, %c0_28] : memref<1x32xf32, #tpu.memory_space<vmem>>, vector<1x32xf32>
    %c0_29 = arith.constant 0 : index
    %c0_30 = arith.constant 0 : index
    %38 = vector.load %arg16[%c0_29, %c0_30] : memref<32x32xf32, #tpu.memory_space<vmem>>, vector<32x32xf32>
    %c0_31 = arith.constant 0 : index
    %c0_32 = arith.constant 0 : index
    %39 = vector.load %arg17[%c0_31, %c0_32] : memref<1x32xf32, #tpu.memory_space<vmem>>, vector<1x32xf32>
    %cst_33 = arith.constant dense<0.000000e+00> : vector<16x32xf32>
    %40 = tpu.matmul %31, %32, %cst_33 {dimension_numbers = #tpu.dot_dimension_numbers<[1], [0], [0], [1], [0, 0, 1, 1], [], []>} : vector<16x32xf32>, vector<32x32xf32>, vector<16x32xf32> -> vector<16x32xf32>
    %41 = vector.broadcast %33 : vector<1x32xf32> to vector<16x32xf32>
    %42 = arith.addf %40, %41 : vector<16x32xf32>
    %cst_34 = arith.constant dense<0.000000e+00> : vector<16x32xf32>
    %43 = tpu.matmul %31, %34, %cst_34 {dimension_numbers = #tpu.dot_dimension_numbers<[1], [0], [0], [1], [0, 0, 1, 1], [], []>} : vector<16x32xf32>, vector<32x32xf32>, vector<16x32xf32> -> vector<16x32xf32>
    %44 = vector.broadcast %35 : vector<1x32xf32> to vector<16x32xf32>
    %45 = arith.addf %43, %44 : vector<16x32xf32>
    %cst_35 = arith.constant dense<0.000000e+00> : vector<16x32xf32>
    %46 = tpu.matmul %31, %36, %cst_35 {dimension_numbers = #tpu.dot_dimension_numbers<[1], [0], [0], [1], [0, 0, 1, 1], [], []>} : vector<16x32xf32>, vector<32x32xf32>, vector<16x32xf32> -> vector<16x32xf32>
    %47 = vector.broadcast %37 : vector<1x32xf32> to vector<16x32xf32>
    %48 = arith.addf %46, %47 : vector<16x32xf32>
    %49 = vector.extract_strided_slice %42 {offsets = [0, 0], sizes = [16, 8], strides = [1, 1]} : vector<16x32xf32> to vector<16x8xf32>
    %50 = vector.extract_strided_slice %45 {offsets = [0, 0], sizes = [16, 8], strides = [1, 1]} : vector<16x32xf32> to vector<16x8xf32>
    %51 = tpu.transpose %50, [1, 0] : vector<16x8xf32> -> vector<8x16xf32>
    %cst_36 = arith.constant dense<0.000000e+00> : vector<16x16xf32>
    %52 = tpu.matmul %49, %51, %cst_36 {dimension_numbers = #tpu.dot_dimension_numbers<[1], [0], [0], [1], [0, 0, 1, 1], [], []>} : vector<16x8xf32>, vector<8x16xf32>, vector<16x16xf32> -> vector<16x16xf32>
    %cst_37 = arith.constant -1.000000e+09 : f32
    %53 = vector.broadcast %cst_37 : f32 to vector<16x16xf32>
    %54 = arith.select %4, %52, %53 : vector<16x16xi1>, vector<16x16xf32>
    %cst_38 = arith.constant dense<0xFF800000> : vector<16xf32>
    %55 = vector.multi_reduction <maximumf>, %54, %cst_38 [1] : vector<16x16xf32> to vector<16xf32>
    %56 = vector.shape_cast %55 : vector<16xf32> to vector<16x1xf32>
    %57 = vector.broadcast %56 : vector<16x1xf32> to vector<16x16xf32>
    %58 = arith.subf %54, %57 : vector<16x16xf32>
    %59 = math.exp %58 : vector<16x16xf32>
    %cst_39 = arith.constant dense<0.000000e+00> : vector<16xf32>
    %60 = vector.multi_reduction <add>, %59, %cst_39 [1] : vector<16x16xf32> to vector<16xf32>
    %61 = vector.shape_cast %60 : vector<16xf32> to vector<16x1xf32>
    %62 = tpu.reciprocal %61 {approx = true} : vector<16x1xf32> -> vector<16x1xf32>
    %63 = vector.broadcast %62 : vector<16x1xf32> to vector<16x16xf32>
    %64 = arith.mulf %59, %63 : vector<16x16xf32>
    %65 = vector.extract_strided_slice %48 {offsets = [0, 0], sizes = [16, 8], strides = [1, 1]} : vector<16x32xf32> to vector<16x8xf32>
    %cst_40 = arith.constant dense<0.000000e+00> : vector<16x8xf32>
    %66 = tpu.matmul %64, %65, %cst_40 {dimension_numbers = #tpu.dot_dimension_numbers<[1], [0], [0], [1], [0, 0, 1, 1], [], []>} : vector<16x16xf32>, vector<16x8xf32>, vector<16x8xf32> -> vector<16x8xf32>
    %67 = vector.extract_strided_slice %38 {offsets = [0, 0], sizes = [8, 32], strides = [1, 1]} : vector<32x32xf32> to vector<8x32xf32>
    %cst_41 = arith.constant dense<0.000000e+00> : vector<16x32xf32>
    %68 = tpu.matmul %66, %67, %cst_41 {dimension_numbers = #tpu.dot_dimension_numbers<[1], [0], [0], [1], [0, 0, 1, 1], [], []>} : vector<16x8xf32>, vector<8x32xf32>, vector<16x32xf32> -> vector<16x32xf32>
    %69 = vector.extract_strided_slice %42 {offsets = [0, 8], sizes = [16, 8], strides = [1, 1]} : vector<16x32xf32> to vector<16x8xf32>
    %70 = vector.extract_strided_slice %45 {offsets = [0, 8], sizes = [16, 8], strides = [1, 1]} : vector<16x32xf32> to vector<16x8xf32>
    %71 = tpu.transpose %70, [1, 0] : vector<16x8xf32> -> vector<8x16xf32>
    %cst_42 = arith.constant dense<0.000000e+00> : vector<16x16xf32>
    %72 = tpu.matmul %69, %71, %cst_42 {dimension_numbers = #tpu.dot_dimension_numbers<[1], [0], [0], [1], [0, 0, 1, 1], [], []>} : vector<16x8xf32>, vector<8x16xf32>, vector<16x16xf32> -> vector<16x16xf32>
    %cst_43 = arith.constant -1.000000e+09 : f32
    %73 = vector.broadcast %cst_43 : f32 to vector<16x16xf32>
    %74 = arith.select %4, %72, %73 : vector<16x16xi1>, vector<16x16xf32>
    %cst_44 = arith.constant dense<0xFF800000> : vector<16xf32>
    %75 = vector.multi_reduction <maximumf>, %74, %cst_44 [1] : vector<16x16xf32> to vector<16xf32>
    %76 = vector.shape_cast %75 : vector<16xf32> to vector<16x1xf32>
    %77 = vector.broadcast %76 : vector<16x1xf32> to vector<16x16xf32>
    %78 = arith.subf %74, %77 : vector<16x16xf32>
    %79 = math.exp %78 : vector<16x16xf32>
    %cst_45 = arith.constant dense<0.000000e+00> : vector<16xf32>
    %80 = vector.multi_reduction <add>, %79, %cst_45 [1] : vector<16x16xf32> to vector<16xf32>
    %81 = vector.shape_cast %80 : vector<16xf32> to vector<16x1xf32>
    %82 = tpu.reciprocal %81 {approx = true} : vector<16x1xf32> -> vector<16x1xf32>
    %83 = vector.broadcast %82 : vector<16x1xf32> to vector<16x16xf32>
    %84 = arith.mulf %79, %83 : vector<16x16xf32>
    %85 = vector.extract_strided_slice %48 {offsets = [0, 8], sizes = [16, 8], strides = [1, 1]} : vector<16x32xf32> to vector<16x8xf32>
    %cst_46 = arith.constant dense<0.000000e+00> : vector<16x8xf32>
    %86 = tpu.matmul %84, %85, %cst_46 {dimension_numbers = #tpu.dot_dimension_numbers<[1], [0], [0], [1], [0, 0, 1, 1], [], []>} : vector<16x16xf32>, vector<16x8xf32>, vector<16x8xf32> -> vector<16x8xf32>
    %87 = vector.extract_strided_slice %38 {offsets = [8, 0], sizes = [8, 32], strides = [1, 1]} : vector<32x32xf32> to vector<8x32xf32>
    %cst_47 = arith.constant dense<0.000000e+00> : vector<16x32xf32>
    %88 = tpu.matmul %86, %87, %cst_47 {dimension_numbers = #tpu.dot_dimension_numbers<[1], [0], [0], [1], [0, 0, 1, 1], [], []>} : vector<16x8xf32>, vector<8x32xf32>, vector<16x32xf32> -> vector<16x32xf32>
    %89 = arith.addf %68, %88 : vector<16x32xf32>
    %90 = vector.extract_strided_slice %42 {offsets = [0, 16], sizes = [16, 8], strides = [1, 1]} : vector<16x32xf32> to vector<16x8xf32>
    %91 = vector.extract_strided_slice %45 {offsets = [0, 16], sizes = [16, 8], strides = [1, 1]} : vector<16x32xf32> to vector<16x8xf32>
    %92 = tpu.transpose %91, [1, 0] : vector<16x8xf32> -> vector<8x16xf32>
    %cst_48 = arith.constant dense<0.000000e+00> : vector<16x16xf32>
    %93 = tpu.matmul %90, %92, %cst_48 {dimension_numbers = #tpu.dot_dimension_numbers<[1], [0], [0], [1], [0, 0, 1, 1], [], []>} : vector<16x8xf32>, vector<8x16xf32>, vector<16x16xf32> -> vector<16x16xf32>
    %cst_49 = arith.constant -1.000000e+09 : f32
    %94 = vector.broadcast %cst_49 : f32 to vector<16x16xf32>
    %95 = arith.select %4, %93, %94 : vector<16x16xi1>, vector<16x16xf32>
    %cst_50 = arith.constant dense<0xFF800000> : vector<16xf32>
    %96 = vector.multi_reduction <maximumf>, %95, %cst_50 [1] : vector<16x16xf32> to vector<16xf32>
    %97 = vector.shape_cast %96 : vector<16xf32> to vector<16x1xf32>
    %98 = vector.broadcast %97 : vector<16x1xf32> to vector<16x16xf32>
    %99 = arith.subf %95, %98 : vector<16x16xf32>
    %100 = math.exp %99 : vector<16x16xf32>
    %cst_51 = arith.constant dense<0.000000e+00> : vector<16xf32>
    %101 = vector.multi_reduction <add>, %100, %cst_51 [1] : vector<16x16xf32> to vector<16xf32>
    %102 = vector.shape_cast %101 : vector<16xf32> to vector<16x1xf32>
    %103 = tpu.reciprocal %102 {approx = true} : vector<16x1xf32> -> vector<16x1xf32>
    %104 = vector.broadcast %103 : vector<16x1xf32> to vector<16x16xf32>
    %105 = arith.mulf %100, %104 : vector<16x16xf32>
    %106 = vector.extract_strided_slice %48 {offsets = [0, 16], sizes = [16, 8], strides = [1, 1]} : vector<16x32xf32> to vector<16x8xf32>
    %cst_52 = arith.constant dense<0.000000e+00> : vector<16x8xf32>
    %107 = tpu.matmul %105, %106, %cst_52 {dimension_numbers = #tpu.dot_dimension_numbers<[1], [0], [0], [1], [0, 0, 1, 1], [], []>} : vector<16x16xf32>, vector<16x8xf32>, vector<16x8xf32> -> vector<16x8xf32>
    %108 = vector.extract_strided_slice %38 {offsets = [16, 0], sizes = [8, 32], strides = [1, 1]} : vector<32x32xf32> to vector<8x32xf32>
    %cst_53 = arith.constant dense<0.000000e+00> : vector<16x32xf32>
    %109 = tpu.matmul %107, %108, %cst_53 {dimension_numbers = #tpu.dot_dimension_numbers<[1], [0], [0], [1], [0, 0, 1, 1], [], []>} : vector<16x8xf32>, vector<8x32xf32>, vector<16x32xf32> -> vector<16x32xf32>
    %110 = arith.addf %89, %109 : vector<16x32xf32>
    %111 = vector.extract_strided_slice %42 {offsets = [0, 24], sizes = [16, 8], strides = [1, 1]} : vector<16x32xf32> to vector<16x8xf32>
    %112 = vector.extract_strided_slice %45 {offsets = [0, 24], sizes = [16, 8], strides = [1, 1]} : vector<16x32xf32> to vector<16x8xf32>
    %113 = tpu.transpose %112, [1, 0] : vector<16x8xf32> -> vector<8x16xf32>
    %cst_54 = arith.constant dense<0.000000e+00> : vector<16x16xf32>
    %114 = tpu.matmul %111, %113, %cst_54 {dimension_numbers = #tpu.dot_dimension_numbers<[1], [0], [0], [1], [0, 0, 1, 1], [], []>} : vector<16x8xf32>, vector<8x16xf32>, vector<16x16xf32> -> vector<16x16xf32>
    %cst_55 = arith.constant -1.000000e+09 : f32
    %115 = vector.broadcast %cst_55 : f32 to vector<16x16xf32>
    %116 = arith.select %4, %114, %115 : vector<16x16xi1>, vector<16x16xf32>
    %cst_56 = arith.constant dense<0xFF800000> : vector<16xf32>
    %117 = vector.multi_reduction <maximumf>, %116, %cst_56 [1] : vector<16x16xf32> to vector<16xf32>
    %118 = vector.shape_cast %117 : vector<16xf32> to vector<16x1xf32>
    %119 = vector.broadcast %118 : vector<16x1xf32> to vector<16x16xf32>
    %120 = arith.subf %116, %119 : vector<16x16xf32>
    %121 = math.exp %120 : vector<16x16xf32>
    %cst_57 = arith.constant dense<0.000000e+00> : vector<16xf32>
    %122 = vector.multi_reduction <add>, %121, %cst_57 [1] : vector<16x16xf32> to vector<16xf32>
    %123 = vector.shape_cast %122 : vector<16xf32> to vector<16x1xf32>
    %124 = tpu.reciprocal %123 {approx = true} : vector<16x1xf32> -> vector<16x1xf32>
    %125 = vector.broadcast %124 : vector<16x1xf32> to vector<16x16xf32>
    %126 = arith.mulf %121, %125 : vector<16x16xf32>
    %127 = vector.extract_strided_slice %48 {offsets = [0, 24], sizes = [16, 8], strides = [1, 1]} : vector<16x32xf32> to vector<16x8xf32>
    %cst_58 = arith.constant dense<0.000000e+00> : vector<16x8xf32>
    %128 = tpu.matmul %126, %127, %cst_58 {dimension_numbers = #tpu.dot_dimension_numbers<[1], [0], [0], [1], [0, 0, 1, 1], [], []>} : vector<16x16xf32>, vector<16x8xf32>, vector<16x8xf32> -> vector<16x8xf32>
    %129 = vector.extract_strided_slice %38 {offsets = [24, 0], sizes = [8, 32], strides = [1, 1]} : vector<32x32xf32> to vector<8x32xf32>
    %cst_59 = arith.constant dense<0.000000e+00> : vector<16x32xf32>
    %130 = tpu.matmul %128, %129, %cst_59 {dimension_numbers = #tpu.dot_dimension_numbers<[1], [0], [0], [1], [0, 0, 1, 1], [], []>} : vector<16x8xf32>, vector<8x32xf32>, vector<16x32xf32> -> vector<16x32xf32>
    %131 = arith.addf %110, %130 : vector<16x32xf32>
    %132 = vector.broadcast %39 : vector<1x32xf32> to vector<16x32xf32>
    %133 = arith.addf %131, %132 : vector<16x32xf32>
    %134 = arith.addf %0, %133 : vector<16x32xf32>
    %c0_60 = arith.constant 0 : index
    %c0_61 = arith.constant 0 : index
    %135 = vector.load %arg6[%c0_60, %c0_61] : memref<1x32xf32, #tpu.memory_space<vmem>>, vector<1x32xf32>
    %c0_62 = arith.constant 0 : index
    %c0_63 = arith.constant 0 : index
    %136 = vector.load %arg7[%c0_62, %c0_63] : memref<1x32xf32, #tpu.memory_space<vmem>>, vector<1x32xf32>
    %cst_64 = arith.constant dense<0.000000e+00> : vector<16xf32>
    %137 = vector.multi_reduction <add>, %134, %cst_64 [1] : vector<16x32xf32> to vector<16xf32>
    %138 = vector.shape_cast %137 : vector<16xf32> to vector<16x1xf32>
    %cst_65 = arith.constant 3.200000e+01 : f32
    %139 = vector.broadcast %cst_65 : f32 to vector<16x1xf32>
    %140 = arith.divf %138, %139 : vector<16x1xf32>
    %141 = vector.broadcast %140 : vector<16x1xf32> to vector<16x32xf32>
    %142 = arith.subf %134, %141 : vector<16x32xf32>
    %143 = arith.mulf %142, %142 : vector<16x32xf32>
    %cst_66 = arith.constant dense<0.000000e+00> : vector<16xf32>
    %144 = vector.multi_reduction <add>, %143, %cst_66 [1] : vector<16x32xf32> to vector<16xf32>
    %145 = vector.shape_cast %144 : vector<16xf32> to vector<16x1xf32>
    %cst_67 = arith.constant 3.200000e+01 : f32
    %146 = vector.broadcast %cst_67 : f32 to vector<16x1xf32>
    %147 = arith.divf %145, %146 : vector<16x1xf32>
    %148 = vector.broadcast %140 : vector<16x1xf32> to vector<16x32xf32>
    %149 = arith.subf %134, %148 : vector<16x32xf32>
    %cst_68 = arith.constant 9.99999974E-6 : f32
    %150 = vector.broadcast %cst_68 : f32 to vector<16x1xf32>
    %151 = arith.addf %147, %150 : vector<16x1xf32>
    %152 = math.rsqrt %151 : vector<16x1xf32>
    %153 = vector.broadcast %152 : vector<16x1xf32> to vector<16x32xf32>
    %154 = arith.mulf %149, %153 : vector<16x32xf32>
    %155 = vector.broadcast %135 : vector<1x32xf32> to vector<16x32xf32>
    %156 = arith.mulf %154, %155 : vector<16x32xf32>
    %157 = vector.broadcast %136 : vector<1x32xf32> to vector<16x32xf32>
    %158 = arith.addf %156, %157 : vector<16x32xf32>
    %c0_69 = arith.constant 0 : index
    %c0_70 = arith.constant 0 : index
    %159 = vector.load %arg18[%c0_69, %c0_70] : memref<32x32xf32, #tpu.memory_space<vmem>>, vector<32x32xf32>
    %c0_71 = arith.constant 0 : index
    %c0_72 = arith.constant 0 : index
    %160 = vector.load %arg19[%c0_71, %c0_72] : memref<1x32xf32, #tpu.memory_space<vmem>>, vector<1x32xf32>
    %c0_73 = arith.constant 0 : index
    %c0_74 = arith.constant 0 : index
    %161 = vector.load %arg20[%c0_73, %c0_74] : memref<32x32xf32, #tpu.memory_space<vmem>>, vector<32x32xf32>
    %c0_75 = arith.constant 0 : index
    %c0_76 = arith.constant 0 : index
    %162 = vector.load %arg21[%c0_75, %c0_76] : memref<1x32xf32, #tpu.memory_space<vmem>>, vector<1x32xf32>
    %c0_77 = arith.constant 0 : index
    %c0_78 = arith.constant 0 : index
    %163 = vector.load %arg22[%c0_77, %c0_78] : memref<32x32xf32, #tpu.memory_space<vmem>>, vector<32x32xf32>
    %c0_79 = arith.constant 0 : index
    %c0_80 = arith.constant 0 : index
    %164 = vector.load %arg23[%c0_79, %c0_80] : memref<1x32xf32, #tpu.memory_space<vmem>>, vector<1x32xf32>
    %c0_81 = arith.constant 0 : index
    %c0_82 = arith.constant 0 : index
    %165 = vector.load %arg24[%c0_81, %c0_82] : memref<32x32xf32, #tpu.memory_space<vmem>>, vector<32x32xf32>
    %c0_83 = arith.constant 0 : index
    %c0_84 = arith.constant 0 : index
    %166 = vector.load %arg25[%c0_83, %c0_84] : memref<1x32xf32, #tpu.memory_space<vmem>>, vector<1x32xf32>
    %cst_85 = arith.constant dense<0.000000e+00> : vector<16x32xf32>
    %167 = tpu.matmul %158, %159, %cst_85 {dimension_numbers = #tpu.dot_dimension_numbers<[1], [0], [0], [1], [0, 0, 1, 1], [], []>} : vector<16x32xf32>, vector<32x32xf32>, vector<16x32xf32> -> vector<16x32xf32>
    %168 = vector.broadcast %160 : vector<1x32xf32> to vector<16x32xf32>
    %169 = arith.addf %167, %168 : vector<16x32xf32>
    %cst_86 = arith.constant dense<0.000000e+00> : vector<16x32xf32>
    %170 = tpu.matmul %1, %161, %cst_86 {dimension_numbers = #tpu.dot_dimension_numbers<[1], [0], [0], [1], [0, 0, 1, 1], [], []>} : vector<16x32xf32>, vector<32x32xf32>, vector<16x32xf32> -> vector<16x32xf32>
    %171 = vector.broadcast %162 : vector<1x32xf32> to vector<16x32xf32>
    %172 = arith.addf %170, %171 : vector<16x32xf32>
    %cst_87 = arith.constant dense<0.000000e+00> : vector<16x32xf32>
    %173 = tpu.matmul %1, %163, %cst_87 {dimension_numbers = #tpu.dot_dimension_numbers<[1], [0], [0], [1], [0, 0, 1, 1], [], []>} : vector<16x32xf32>, vector<32x32xf32>, vector<16x32xf32> -> vector<16x32xf32>
    %174 = vector.broadcast %164 : vector<1x32xf32> to vector<16x32xf32>
    %175 = arith.addf %173, %174 : vector<16x32xf32>
    %176 = vector.extract_strided_slice %169 {offsets = [0, 0], sizes = [16, 8], strides = [1, 1]} : vector<16x32xf32> to vector<16x8xf32>
    %177 = vector.extract_strided_slice %172 {offsets = [0, 0], sizes = [16, 8], strides = [1, 1]} : vector<16x32xf32> to vector<16x8xf32>
    %178 = tpu.transpose %177, [1, 0] : vector<16x8xf32> -> vector<8x16xf32>
    %cst_88 = arith.constant dense<0.000000e+00> : vector<16x16xf32>
    %179 = tpu.matmul %176, %178, %cst_88 {dimension_numbers = #tpu.dot_dimension_numbers<[1], [0], [0], [1], [0, 0, 1, 1], [], []>} : vector<16x8xf32>, vector<8x16xf32>, vector<16x16xf32> -> vector<16x16xf32>
    %cst_89 = arith.constant -1.000000e+09 : f32
    %180 = vector.broadcast %cst_89 : f32 to vector<16x16xf32>
    %181 = arith.select %7, %179, %180 : vector<16x16xi1>, vector<16x16xf32>
    %cst_90 = arith.constant dense<0xFF800000> : vector<16xf32>
    %182 = vector.multi_reduction <maximumf>, %181, %cst_90 [1] : vector<16x16xf32> to vector<16xf32>
    %183 = vector.shape_cast %182 : vector<16xf32> to vector<16x1xf32>
    %184 = vector.broadcast %183 : vector<16x1xf32> to vector<16x16xf32>
    %185 = arith.subf %181, %184 : vector<16x16xf32>
    %186 = math.exp %185 : vector<16x16xf32>
    %cst_91 = arith.constant dense<0.000000e+00> : vector<16xf32>
    %187 = vector.multi_reduction <add>, %186, %cst_91 [1] : vector<16x16xf32> to vector<16xf32>
    %188 = vector.shape_cast %187 : vector<16xf32> to vector<16x1xf32>
    %189 = tpu.reciprocal %188 {approx = true} : vector<16x1xf32> -> vector<16x1xf32>
    %190 = vector.broadcast %189 : vector<16x1xf32> to vector<16x16xf32>
    %191 = arith.mulf %186, %190 : vector<16x16xf32>
    %192 = vector.extract_strided_slice %175 {offsets = [0, 0], sizes = [16, 8], strides = [1, 1]} : vector<16x32xf32> to vector<16x8xf32>
    %cst_92 = arith.constant dense<0.000000e+00> : vector<16x8xf32>
    %193 = tpu.matmul %191, %192, %cst_92 {dimension_numbers = #tpu.dot_dimension_numbers<[1], [0], [0], [1], [0, 0, 1, 1], [], []>} : vector<16x16xf32>, vector<16x8xf32>, vector<16x8xf32> -> vector<16x8xf32>
    %194 = vector.extract_strided_slice %165 {offsets = [0, 0], sizes = [8, 32], strides = [1, 1]} : vector<32x32xf32> to vector<8x32xf32>
    %cst_93 = arith.constant dense<0.000000e+00> : vector<16x32xf32>
    %195 = tpu.matmul %193, %194, %cst_93 {dimension_numbers = #tpu.dot_dimension_numbers<[1], [0], [0], [1], [0, 0, 1, 1], [], []>} : vector<16x8xf32>, vector<8x32xf32>, vector<16x32xf32> -> vector<16x32xf32>
    %196 = vector.extract_strided_slice %169 {offsets = [0, 8], sizes = [16, 8], strides = [1, 1]} : vector<16x32xf32> to vector<16x8xf32>
    %197 = vector.extract_strided_slice %172 {offsets = [0, 8], sizes = [16, 8], strides = [1, 1]} : vector<16x32xf32> to vector<16x8xf32>
    %198 = tpu.transpose %197, [1, 0] : vector<16x8xf32> -> vector<8x16xf32>
    %cst_94 = arith.constant dense<0.000000e+00> : vector<16x16xf32>
    %199 = tpu.matmul %196, %198, %cst_94 {dimension_numbers = #tpu.dot_dimension_numbers<[1], [0], [0], [1], [0, 0, 1, 1], [], []>} : vector<16x8xf32>, vector<8x16xf32>, vector<16x16xf32> -> vector<16x16xf32>
    %cst_95 = arith.constant -1.000000e+09 : f32
    %200 = vector.broadcast %cst_95 : f32 to vector<16x16xf32>
    %201 = arith.select %7, %199, %200 : vector<16x16xi1>, vector<16x16xf32>
    %cst_96 = arith.constant dense<0xFF800000> : vector<16xf32>
    %202 = vector.multi_reduction <maximumf>, %201, %cst_96 [1] : vector<16x16xf32> to vector<16xf32>
    %203 = vector.shape_cast %202 : vector<16xf32> to vector<16x1xf32>
    %204 = vector.broadcast %203 : vector<16x1xf32> to vector<16x16xf32>
    %205 = arith.subf %201, %204 : vector<16x16xf32>
    %206 = math.exp %205 : vector<16x16xf32>
    %cst_97 = arith.constant dense<0.000000e+00> : vector<16xf32>
    %207 = vector.multi_reduction <add>, %206, %cst_97 [1] : vector<16x16xf32> to vector<16xf32>
    %208 = vector.shape_cast %207 : vector<16xf32> to vector<16x1xf32>
    %209 = tpu.reciprocal %208 {approx = true} : vector<16x1xf32> -> vector<16x1xf32>
    %210 = vector.broadcast %209 : vector<16x1xf32> to vector<16x16xf32>
    %211 = arith.mulf %206, %210 : vector<16x16xf32>
    %212 = vector.extract_strided_slice %175 {offsets = [0, 8], sizes = [16, 8], strides = [1, 1]} : vector<16x32xf32> to vector<16x8xf32>
    %cst_98 = arith.constant dense<0.000000e+00> : vector<16x8xf32>
    %213 = tpu.matmul %211, %212, %cst_98 {dimension_numbers = #tpu.dot_dimension_numbers<[1], [0], [0], [1], [0, 0, 1, 1], [], []>} : vector<16x16xf32>, vector<16x8xf32>, vector<16x8xf32> -> vector<16x8xf32>
    %214 = vector.extract_strided_slice %165 {offsets = [8, 0], sizes = [8, 32], strides = [1, 1]} : vector<32x32xf32> to vector<8x32xf32>
    %cst_99 = arith.constant dense<0.000000e+00> : vector<16x32xf32>
    %215 = tpu.matmul %213, %214, %cst_99 {dimension_numbers = #tpu.dot_dimension_numbers<[1], [0], [0], [1], [0, 0, 1, 1], [], []>} : vector<16x8xf32>, vector<8x32xf32>, vector<16x32xf32> -> vector<16x32xf32>
    %216 = arith.addf %195, %215 : vector<16x32xf32>
    %217 = vector.extract_strided_slice %169 {offsets = [0, 16], sizes = [16, 8], strides = [1, 1]} : vector<16x32xf32> to vector<16x8xf32>
    %218 = vector.extract_strided_slice %172 {offsets = [0, 16], sizes = [16, 8], strides = [1, 1]} : vector<16x32xf32> to vector<16x8xf32>
    %219 = tpu.transpose %218, [1, 0] : vector<16x8xf32> -> vector<8x16xf32>
    %cst_100 = arith.constant dense<0.000000e+00> : vector<16x16xf32>
    %220 = tpu.matmul %217, %219, %cst_100 {dimension_numbers = #tpu.dot_dimension_numbers<[1], [0], [0], [1], [0, 0, 1, 1], [], []>} : vector<16x8xf32>, vector<8x16xf32>, vector<16x16xf32> -> vector<16x16xf32>
    %cst_101 = arith.constant -1.000000e+09 : f32
    %221 = vector.broadcast %cst_101 : f32 to vector<16x16xf32>
    %222 = arith.select %7, %220, %221 : vector<16x16xi1>, vector<16x16xf32>
    %cst_102 = arith.constant dense<0xFF800000> : vector<16xf32>
    %223 = vector.multi_reduction <maximumf>, %222, %cst_102 [1] : vector<16x16xf32> to vector<16xf32>
    %224 = vector.shape_cast %223 : vector<16xf32> to vector<16x1xf32>
    %225 = vector.broadcast %224 : vector<16x1xf32> to vector<16x16xf32>
    %226 = arith.subf %222, %225 : vector<16x16xf32>
    %227 = math.exp %226 : vector<16x16xf32>
    %cst_103 = arith.constant dense<0.000000e+00> : vector<16xf32>
    %228 = vector.multi_reduction <add>, %227, %cst_103 [1] : vector<16x16xf32> to vector<16xf32>
    %229 = vector.shape_cast %228 : vector<16xf32> to vector<16x1xf32>
    %230 = tpu.reciprocal %229 {approx = true} : vector<16x1xf32> -> vector<16x1xf32>
    %231 = vector.broadcast %230 : vector<16x1xf32> to vector<16x16xf32>
    %232 = arith.mulf %227, %231 : vector<16x16xf32>
    %233 = vector.extract_strided_slice %175 {offsets = [0, 16], sizes = [16, 8], strides = [1, 1]} : vector<16x32xf32> to vector<16x8xf32>
    %cst_104 = arith.constant dense<0.000000e+00> : vector<16x8xf32>
    %234 = tpu.matmul %232, %233, %cst_104 {dimension_numbers = #tpu.dot_dimension_numbers<[1], [0], [0], [1], [0, 0, 1, 1], [], []>} : vector<16x16xf32>, vector<16x8xf32>, vector<16x8xf32> -> vector<16x8xf32>
    %235 = vector.extract_strided_slice %165 {offsets = [16, 0], sizes = [8, 32], strides = [1, 1]} : vector<32x32xf32> to vector<8x32xf32>
    %cst_105 = arith.constant dense<0.000000e+00> : vector<16x32xf32>
    %236 = tpu.matmul %234, %235, %cst_105 {dimension_numbers = #tpu.dot_dimension_numbers<[1], [0], [0], [1], [0, 0, 1, 1], [], []>} : vector<16x8xf32>, vector<8x32xf32>, vector<16x32xf32> -> vector<16x32xf32>
    %237 = arith.addf %216, %236 : vector<16x32xf32>
    %238 = vector.extract_strided_slice %169 {offsets = [0, 24], sizes = [16, 8], strides = [1, 1]} : vector<16x32xf32> to vector<16x8xf32>
    %239 = vector.extract_strided_slice %172 {offsets = [0, 24], sizes = [16, 8], strides = [1, 1]} : vector<16x32xf32> to vector<16x8xf32>
    %240 = tpu.transpose %239, [1, 0] : vector<16x8xf32> -> vector<8x16xf32>
    %cst_106 = arith.constant dense<0.000000e+00> : vector<16x16xf32>
    %241 = tpu.matmul %238, %240, %cst_106 {dimension_numbers = #tpu.dot_dimension_numbers<[1], [0], [0], [1], [0, 0, 1, 1], [], []>} : vector<16x8xf32>, vector<8x16xf32>, vector<16x16xf32> -> vector<16x16xf32>
    %cst_107 = arith.constant -1.000000e+09 : f32
    %242 = vector.broadcast %cst_107 : f32 to vector<16x16xf32>
    %243 = arith.select %7, %241, %242 : vector<16x16xi1>, vector<16x16xf32>
    %cst_108 = arith.constant dense<0xFF800000> : vector<16xf32>
    %244 = vector.multi_reduction <maximumf>, %243, %cst_108 [1] : vector<16x16xf32> to vector<16xf32>
    %245 = vector.shape_cast %244 : vector<16xf32> to vector<16x1xf32>
    %246 = vector.broadcast %245 : vector<16x1xf32> to vector<16x16xf32>
    %247 = arith.subf %243, %246 : vector<16x16xf32>
    %248 = math.exp %247 : vector<16x16xf32>
    %cst_109 = arith.constant dense<0.000000e+00> : vector<16xf32>
    %249 = vector.multi_reduction <add>, %248, %cst_109 [1] : vector<16x16xf32> to vector<16xf32>
    %250 = vector.shape_cast %249 : vector<16xf32> to vector<16x1xf32>
    %251 = tpu.reciprocal %250 {approx = true} : vector<16x1xf32> -> vector<16x1xf32>
    %252 = vector.broadcast %251 : vector<16x1xf32> to vector<16x16xf32>
    %253 = arith.mulf %248, %252 : vector<16x16xf32>
    %254 = vector.extract_strided_slice %175 {offsets = [0, 24], sizes = [16, 8], strides = [1, 1]} : vector<16x32xf32> to vector<16x8xf32>
    %cst_110 = arith.constant dense<0.000000e+00> : vector<16x8xf32>
    %255 = tpu.matmul %253, %254, %cst_110 {dimension_numbers = #tpu.dot_dimension_numbers<[1], [0], [0], [1], [0, 0, 1, 1], [], []>} : vector<16x16xf32>, vector<16x8xf32>, vector<16x8xf32> -> vector<16x8xf32>
    %256 = vector.extract_strided_slice %165 {offsets = [24, 0], sizes = [8, 32], strides = [1, 1]} : vector<32x32xf32> to vector<8x32xf32>
    %cst_111 = arith.constant dense<0.000000e+00> : vector<16x32xf32>
    %257 = tpu.matmul %255, %256, %cst_111 {dimension_numbers = #tpu.dot_dimension_numbers<[1], [0], [0], [1], [0, 0, 1, 1], [], []>} : vector<16x8xf32>, vector<8x32xf32>, vector<16x32xf32> -> vector<16x32xf32>
    %258 = arith.addf %237, %257 : vector<16x32xf32>
    %259 = vector.broadcast %166 : vector<1x32xf32> to vector<16x32xf32>
    %260 = arith.addf %258, %259 : vector<16x32xf32>
    %261 = arith.addf %134, %260 : vector<16x32xf32>
    %c0_112 = arith.constant 0 : index
    %c0_113 = arith.constant 0 : index
    %262 = vector.load %arg8[%c0_112, %c0_113] : memref<1x32xf32, #tpu.memory_space<vmem>>, vector<1x32xf32>
    %c0_114 = arith.constant 0 : index
    %c0_115 = arith.constant 0 : index
    %263 = vector.load %arg9[%c0_114, %c0_115] : memref<1x32xf32, #tpu.memory_space<vmem>>, vector<1x32xf32>
    %cst_116 = arith.constant dense<0.000000e+00> : vector<16xf32>
    %264 = vector.multi_reduction <add>, %261, %cst_116 [1] : vector<16x32xf32> to vector<16xf32>
    %265 = vector.shape_cast %264 : vector<16xf32> to vector<16x1xf32>
    %cst_117 = arith.constant 3.200000e+01 : f32
    %266 = vector.broadcast %cst_117 : f32 to vector<16x1xf32>
    %267 = arith.divf %265, %266 : vector<16x1xf32>
    %268 = vector.broadcast %267 : vector<16x1xf32> to vector<16x32xf32>
    %269 = arith.subf %261, %268 : vector<16x32xf32>
    %270 = arith.mulf %269, %269 : vector<16x32xf32>
    %cst_118 = arith.constant dense<0.000000e+00> : vector<16xf32>
    %271 = vector.multi_reduction <add>, %270, %cst_118 [1] : vector<16x32xf32> to vector<16xf32>
    %272 = vector.shape_cast %271 : vector<16xf32> to vector<16x1xf32>
    %cst_119 = arith.constant 3.200000e+01 : f32
    %273 = vector.broadcast %cst_119 : f32 to vector<16x1xf32>
    %274 = arith.divf %272, %273 : vector<16x1xf32>
    %275 = vector.broadcast %267 : vector<16x1xf32> to vector<16x32xf32>
    %276 = arith.subf %261, %275 : vector<16x32xf32>
    %cst_120 = arith.constant 9.99999974E-6 : f32
    %277 = vector.broadcast %cst_120 : f32 to vector<16x1xf32>
    %278 = arith.addf %274, %277 : vector<16x1xf32>
    %279 = math.rsqrt %278 : vector<16x1xf32>
    %280 = vector.broadcast %279 : vector<16x1xf32> to vector<16x32xf32>
    %281 = arith.mulf %276, %280 : vector<16x32xf32>
    %282 = vector.broadcast %262 : vector<1x32xf32> to vector<16x32xf32>
    %283 = arith.mulf %281, %282 : vector<16x32xf32>
    %284 = vector.broadcast %263 : vector<1x32xf32> to vector<16x32xf32>
    %285 = arith.addf %283, %284 : vector<16x32xf32>
    %c0_121 = arith.constant 0 : index
    %c0_122 = arith.constant 0 : index
    %286 = vector.load %arg26[%c0_121, %c0_122] : memref<32x64xf32, #tpu.memory_space<vmem>>, vector<32x64xf32>
    %cst_123 = arith.constant dense<0.000000e+00> : vector<16x64xf32>
    %287 = tpu.matmul %285, %286, %cst_123 {dimension_numbers = #tpu.dot_dimension_numbers<[1], [0], [0], [1], [0, 0, 1, 1], [], []>} : vector<16x32xf32>, vector<32x64xf32>, vector<16x64xf32> -> vector<16x64xf32>
    %c0_124 = arith.constant 0 : index
    %c0_125 = arith.constant 0 : index
    %288 = vector.load %arg27[%c0_124, %c0_125] : memref<1x64xf32, #tpu.memory_space<vmem>>, vector<1x64xf32>
    %289 = vector.broadcast %288 : vector<1x64xf32> to vector<16x64xf32>
    %290 = arith.addf %287, %289 : vector<16x64xf32>
    %cst_126 = arith.constant 0.000000e+00 : f32
    %291 = vector.broadcast %cst_126 : f32 to vector<16x64xf32>
    %292 = arith.maximumf %290, %291 : vector<16x64xf32>
    %c0_127 = arith.constant 0 : index
    %c0_128 = arith.constant 0 : index
    %293 = vector.load %arg28[%c0_127, %c0_128] : memref<64x32xf32, #tpu.memory_space<vmem>>, vector<64x32xf32>
    %cst_129 = arith.constant dense<0.000000e+00> : vector<16x32xf32>
    %294 = tpu.matmul %292, %293, %cst_129 {dimension_numbers = #tpu.dot_dimension_numbers<[1], [0], [0], [1], [0, 0, 1, 1], [], []>} : vector<16x64xf32>, vector<64x32xf32>, vector<16x32xf32> -> vector<16x32xf32>
    %295 = arith.addf %261, %294 : vector<16x32xf32>
    %c0_130 = arith.constant 0 : index
    %c0_131 = arith.constant 0 : index
    %296 = vector.load %arg29[%c0_130, %c0_131] : memref<1x32xf32, #tpu.memory_space<vmem>>, vector<1x32xf32>
    %297 = vector.broadcast %296 : vector<1x32xf32> to vector<16x32xf32>
    %298 = arith.addf %295, %297 : vector<16x32xf32>
    %c0_132 = arith.constant 0 : index
    %c0_133 = arith.constant 0 : index
    %299 = vector.load %arg30[%c0_132, %c0_133] : memref<16x32xf32, #tpu.memory_space<vmem>>, vector<16x32xf32>
    tpu.vector_store %arg30[%c0_132, %c0_133], %298 {strides = array<i32>} : memref<16x32xf32, #tpu.memory_space<vmem>>, vector<16x32xf32>,
    return
  }
}

</mosaic_0001>

<bundles_post_ra>
// kernel: tpu_custom_call.1
= control target key start
LH: loop header
LB: loop body
LE: loop exit
PB: predicated region body
PF: predicated region fallthrough
CT: control target
= control target key end

     0   :  { %s2379_s6 = smov 1   ;;  %s2380_s10 = smov 2   ;;  %s3003_s0 = inlined_call_operand.smem [shape: u32[31], index: -1, kind: input, shape index: {}] }
   0x1   :  { %s2434_s5 = sld [smem:[%s3003_s0]]   ;;  %s2381_s14 = smov 3  }
   0x2   :  { %s2439_s9 = sld [smem:[%s3003_s0 + %s2379_s6]]   ;;  %s2382_s18 = smov 4  }
   0x3   :  { %s2444_s13 = sld [smem:[%s3003_s0 + %s2380_s10]]   ;;  %s2383_s22 = smov 5  }
   0x4   :  { %s2449_s17 = sld [smem:[%s3003_s0 + %s2381_s14]]   ;;  %s2384_s26 = smov 6  }
   0x5   :  { %s2454_s21 = sld [smem:[%s3003_s0 + %s2382_s18]]   ;;  %s2385_s30 = smov 7  }
   0x6   :  { %s2459_s25 = sld [smem:[%s3003_s0 + %s2383_s22]]   ;;  %s2386_s4 = smov 8  }
   0x7   :  { %s2464_s29 = sld [smem:[%s3003_s0 + %s2384_s26]]   ;;  %s2387_s10 = smov 9  }
   0x8   :  { %s2469_s3 = sld [smem:[%s3003_s0 + %s2385_s30]]   ;;  %s2388_s15 = smov 10  }
   0x9   :  { %s2474_s8 = sld [smem:[%s3003_s0 + %s2386_s4]]   ;;  %s2389_s20 = smov 11  }
   0xa   :  { %s2479_s14 = sld [smem:[%s3003_s0 + %s2387_s10]]   ;;  %s2390_s26 = smov 12  }
   0xb   :  { %s2484_s19 = sld [smem:[%s3003_s0 + %s2388_s15]]   ;;  %s2391_s1 = smov 13  }
   0xc   :  { %3004 = sst [smem:[#allocation27_spill]] %s2459_s25  ;;  %s2392_s7 = smov 14  }
   0xd   :  { %3005 = sst [smem:[#allocation28_spill]] %s2464_s29  ;;  %s2393_s15 = smov 15  }
   0xe   :  { %3006 = sst [smem:[#allocation29_spill]] %s2469_s3  ;;  %s2394_s22 = smov 16  }
   0xf   :  { %3007 = sst [smem:[#allocation30_spill]] %s2474_s8  ;;  %s2395_s28 = smov 17  }
  0x10   :  { %3008 = sst [smem:[#allocation31_spill]] %s2479_s14 }
  0x11   :  { %s2489_s24 = sld [smem:[%s3003_s0 + %s2389_s20]]  }
  0x12   :  { %s2494_s30 = sld [smem:[%s3003_s0 + %s2390_s26]]  }
  0x13   :  { %s2499_s6 = sld [smem:[%s3003_s0 + %s2391_s1]]  }
  0x14   :  { %s2504_s12 = sld [smem:[%s3003_s0 + %s2392_s7]]   ;;  %s2396_s7 = smov 18  }
  0x15   :  { %s2509_s20 = sld [smem:[%s3003_s0 + %s2393_s15]]   ;;  %s2397_s15 = smov 19  }
  0x16   :  { %s2514_s27 = sld [smem:[%s3003_s0 + %s2394_s22]]   ;;  %s2398_s22 = smov 20  }
  0x17   :  { %3009 = sst [smem:[#allocation32_spill]] %s2489_s24 }
  0x18   :  { %s2519_s4 = sld [smem:[%s3003_s0 + %s2395_s28]]   ;;  %s2399_s28 = smov 21  }
  0x19   :  { %3010 = sst [smem:[#allocation33_spill]] %s2499_s6 }
  0x1a   :  { %s2524_s14 = sld [smem:[%s3003_s0 + %s2396_s7]]   ;;  %s2400_s7 = smov 22  }
  0x1b   :  { %3011 = sst [smem:[#allocation34_spill]] %s2509_s20 }
  0x1c   :  { %s2529_s8 = sld [smem:[%s3003_s0 + %s2397_s15]]   ;;  %s2401_s15 = smov 23  }
  0x1d   :  { %s2534_s3 = sld [smem:[%s3003_s0 + %s2398_s22]]   ;;  %s2402_s22 = smov 24  }
  0x1e   :  { %3012 = sst [smem:[#allocation35_spill]] %s2519_s4 }
  0x1f   :  { %s2539_s29 = sld [smem:[%s3003_s0 + %s2399_s28]]   ;;  %s2403_s28 = smov 25  }
  0x20   :  { %s2544_s4 = sld [smem:[%s3003_s0 + %s2400_s7]]   ;;  %s2404_s7 = smov 26  }
  0x21   :  { %s2554_s20 = sld [smem:[%s3003_s0 + %s2402_s22]]   ;;  %s2406_s22 = smov 28  }
  0x22   :  { %3013 = sst [smem:[#allocation36_spill]] %s2529_s8 }
  0x23   :  { %s2549_s8 = sld [smem:[%s3003_s0 + %s2401_s15]]   ;;  %s2405_s15 = smov 27  }
  0x24   :  { %s2564_s24 = sld [smem:[%s3003_s0 + %s2404_s7]]   ;;  %s2408_s7 = smov 30  }
  0x25   :  { %3014 = sst [smem:[#allocation37_spill]] %s2539_s29 }
  0x26   :  { %s2559_s29 = sld [smem:[%s3003_s0 + %s2403_s28]]   ;;  %s2407_s28 = smov 29  }
  0x27   :  { %s2574_s6 = sld [smem:[%s3003_s0 + %s2406_s22]]  }
  0x28   :  { %s2584_s25 = sld [smem:[%s3003_s0 + %s2408_s7]]  }
  0x29   :  { %3015 = sst [smem:[#allocation38_spill]] %s2549_s8 }
  0x2a   :  { %s2569_s8 = sld [smem:[%s3003_s0 + %s2405_s15]]  }
  0x2c   :  { %3016 = sst [smem:[#allocation39_spill]] %s2559_s29 }
  0x2d   :  { %s2579_s29 = sld [smem:[%s3003_s0 + %s2407_s28]]  }
  0x2e   :  { %66 = vsyncpa [#allocation3], 0 }
  0x2f   :  { %67 = vsyncpa [#allocation6], 0 }
  0x30   :  { %68 = vsyncpa [#allocation9], 0 }
  0x31   :  { %69 = vsyncpa [#allocation12], 0 }
  0x32   :  { %70 = vsyncpa [#allocation15], 0 }
  0x33   :  { %71 = vsyncpa [#allocation18], 0 }
  0x34   :  { %72 = vsyncpa [#allocation4], 0  ;;  %s90_s15 = sshll.u32 %s2439_s9, 4  ;;  %s2409_s16 = smov [#allocation5]   ;;  %s91_s15 = int_to_ptr.hbm [resolvable:$true] %s90_s15 }
  0x35   :  { %s92_s18 = sshll.u32 %s2409_s16, 4  ;;  %s116_s22 = sshll.u32 %s2449_s17, 4  ;;  %s93_s18 = int_to_ptr.vmem [resolvable:$true] %s92_s18  ;;  %s117_s22 = int_to_ptr.hbm [resolvable:$true] %s116_s22 }
  0x36   :  { %s2101_s23 = sshra.s32 %s91_s15, 4  ;;  %s2105_s26 = scalar_lea.hbm %s2439_s9, 16  ;;  %s2102_s23 = int_to_ptr.hbm [resolvable:$true] %s2101_s23 }
  0x37   :  { %s2103_s0 = scalar_lea.hbm %s2102_s23, 16  ;;  %p2106_p1 = scmp.lt.s32.totalorder %s2102_s23, %s2439_s9 }
  0x38   :  { %p2104_p0 = scmp.ne.s32.totalorder %s2102_s23, %s2103_s0  ;;  %p2107_p2 = scmp.lt.s32.totalorder %s2105_s26, %s2103_s0 }
  0x3a   :  { %p2108_p3 = por %p2107_p2, %p2106_p1 }
  0x3c   :  { %p2109_p4 = pnand %p2108_p3, %p2104_p0 }
  0x3e   :  { %2112 = shalt.err (!%p2109_p4)
}
  0x3f   :  { %s2410_s28 = smov 128   ;;  %s2411_s1 = smov 8  }
  0x40   :  { %98 = dma.hbm_to_vmem [thread:$0]  %s91_s15, 256, %s93_s18, [#allocation6], %s2410_s28, %s2410_s28, %s2411_s1  }
  0x41   :  { %s2412_s2 = smov [#allocation8]   ;;  %s168_s10 = sshll.u32 %s2524_s14, 4  ;;  %s2594_s10 = int_to_ptr.hbm [resolvable:$true] %s168_s10 }
  0x42   :  { %s118_s7 = sshll.u32 %s2412_s2, 4  ;;  %s2125_s9 = sshra.s32 %s117_s22, 4  ;;  %s119_s7 = int_to_ptr.vmem [resolvable:$true] %s118_s7  ;;  %s2126_s9 = int_to_ptr.hbm [resolvable:$true] %s2125_s9 }
  0x43   :  { %s2127_s11 = scalar_lea.hbm %s2126_s9, 16  ;;  %s2129_s16 = scalar_lea.hbm %s2449_s17, 16 }
  0x44   :  { %p2128_p5 = scmp.ne.s32.totalorder %s2126_s9, %s2127_s11  ;;  %p2130_p6 = scmp.lt.s32.totalorder %s2126_s9, %s2449_s17 }
  0x45   :  { %p2131_p7 = scmp.lt.s32.totalorder %s2129_s16, %s2127_s11 }
  0x47   :  { %p2132_p8 = por %p2131_p7, %p2130_p6 }
  0x49   :  { %p2133_p9 = pnand %p2132_p8, %p2128_p5 }
  0x4b   :  { %2136 = shalt.err (!%p2133_p9)
}
  0x4c   :  { %124 = dma.hbm_to_vmem [thread:$0]  %s117_s22, 256, %s119_s7, [#allocation9], %s2410_s28, %s2410_s28, %s2411_s1  }
  0x4d   :  { %s198_s15 = sshll.u32 %s2544_s4, 4  ;;  %s2413_s18 = smov [#allocation11]   ;;  %s2602_s15 = int_to_ptr.hbm [resolvable:$true] %s198_s15 }
  0x4e   :  { %s170_s23 = sshll.u32 %s2413_s18, 4  ;;  %s2149_s0 = sshra.s32 %s2594_s10, 4  ;;  %s171_s23 = int_to_ptr.vmem [resolvable:$true] %s170_s23  ;;  %s2150_s0 = int_to_ptr.hbm [resolvable:$true] %s2149_s0 }
  0x4f   :  { %s2151_s17 = scalar_lea.hbm %s2150_s0, 32  ;;  %s2153_s26 = scalar_lea.hbm %s2524_s14, 32 }
  0x50   :  { %p2152_p10 = scmp.ne.s32.totalorder %s2150_s0, %s2151_s17  ;;  %p2154_p11 = scmp.lt.s32.totalorder %s2150_s0, %s2524_s14 }
  0x51   :  { %p2155_p12 = scmp.lt.s32.totalorder %s2153_s26, %s2151_s17 }
  0x53   :  { %p2156_p13 = por %p2155_p12, %p2154_p11 }
  0x55   :  { %p2157_p0 = pnand %p2156_p13, %p2152_p10 }
  0x57   :  { %2160 = shalt.err (!%p2157_p0)
}
  0x58   :  { %176 = dma.hbm_to_vmem [thread:$0]  %s2594_s10, 512, %s171_s23, [#allocation12], %s2410_s28, %s2410_s28, %s2411_s1  }
  0x59   :  { %s2414_s22 = smov [#allocation14]   ;;  %s77_s7 = sshll.u32 %s2434_s5, 4  ;;  %s2612_s7 = int_to_ptr.hbm [resolvable:$true] %s77_s7 }
  0x5a   :  { %s200_s2 = sshll.u32 %s2414_s22, 4  ;;  %s2173_s14 = sshra.s32 %s2602_s15, 4  ;;  %s201_s2 = int_to_ptr.vmem [resolvable:$true] %s200_s2  ;;  %s2174_s14 = int_to_ptr.hbm [resolvable:$true] %s2173_s14 }
  0x5b   :  { %s2175_s9 = scalar_lea.hbm %s2174_s14, 32  ;;  %s2177_s11 = scalar_lea.hbm %s2544_s4, 32 }
  0x5c   :  { %p2176_p1 = scmp.ne.s32.totalorder %s2174_s14, %s2175_s9  ;;  %p2178_p2 = scmp.lt.s32.totalorder %s2174_s14, %s2544_s4 }
  0x5d   :  { %p2179_p3 = scmp.lt.s32.totalorder %s2177_s11, %s2175_s9 }
  0x5f   :  { %p2180_p4 = por %p2179_p3, %p2178_p2 }
  0x61   :  { %p2181_p5 = pnand %p2180_p4, %p2176_p1 }
  0x63   :  { %2184 = shalt.err (!%p2181_p5)
}
  0x64   :  { %206 = dma.hbm_to_vmem [thread:$0]  %s2602_s15, 512, %s201_s2, [#allocation15], %s2410_s28, %s2410_s28, %s2411_s1  }
  0x65   :  { %s103_s10 = sshll.u32 %s2444_s13, 4  ;;  %s2415_s16 = smov [#allocation2]   ;;  %s2622_s10 = int_to_ptr.hbm [resolvable:$true] %s103_s10 }
  0x66   :  { %s79_s18 = sshll.u32 %s2415_s16, 4  ;;  %s2197_s4 = sshra.s32 %s2612_s7, 4  ;;  %s80_s18 = int_to_ptr.vmem [resolvable:$true] %s79_s18  ;;  %s2198_s4 = int_to_ptr.hbm [resolvable:$true] %s2197_s4 }
  0x67   :  { %s2199_s23 = scalar_lea.hbm %s2198_s4, 16  ;;  %s2201_s0 = scalar_lea.hbm %s2434_s5, 16 }
  0x68   :  { %p2200_p6 = scmp.ne.s32.totalorder %s2198_s4, %s2199_s23  ;;  %p2202_p7 = scmp.lt.s32.totalorder %s2198_s4, %s2434_s5 }
  0x69   :  { %p2203_p8 = scmp.lt.s32.totalorder %s2201_s0, %s2199_s23 }
  0x6b   :  { %p2204_p9 = por %p2203_p8, %p2202_p7 }
  0x6d   :  { %p2205_p10 = pnand %p2204_p9, %p2200_p6 }
  0x6f   :  { %2208 = shalt.err (!%p2205_p10)
}
  0x70   :  { %85 = dma.hbm_to_vmem [thread:$0]  %s2612_s7, 256, %s80_s18, [#allocation3], %s2410_s28, %s2410_s28, %s2411_s1  }
  0x71   :  { %s2416_s15 = smov [#allocation7]   ;;  %s153_s26 = sshll.u32 %s2514_s27, 4  ;;  %s2632_s26 = int_to_ptr.hbm [resolvable:$true] %s153_s26 }
  0x72   :  { %s105_s17 = sshll.u32 %s2416_s15, 4  ;;  %s2221_s5 = sshra.s32 %s2622_s10, 4  ;;  %s106_s17 = int_to_ptr.vmem [resolvable:$true] %s105_s17  ;;  %s2222_s5 = int_to_ptr.hbm [resolvable:$true] %s2221_s5 }
  0x73   :  { %s2223_s22 = scalar_lea.hbm %s2222_s5, 16  ;;  %s2225_s2 = scalar_lea.hbm %s2444_s13, 16 }
  0x74   :  { %p2224_p11 = scmp.ne.s32.totalorder %s2222_s5, %s2223_s22  ;;  %p2226_p12 = scmp.lt.s32.totalorder %s2222_s5, %s2444_s13 }
  0x75   :  { %p2227_p13 = scmp.lt.s32.totalorder %s2225_s2, %s2223_s22 }
  0x77   :  { %p2228_p0 = por %p2227_p13, %p2226_p12 }
  0x79   :  { %p2229_p1 = pnand %p2228_p0, %p2224_p11 }
  0x7b   :  { %2232 = shalt.err (!%p2229_p1)
}
  0x7c   :  { %111 = dma.hbm_to_vmem [thread:$0]  %s2622_s10, 256, %s106_s17, [#allocation6], %s2410_s28, %s2410_s28, %s2411_s1  }
  0x7d   :  { %s183_s7 = sshll.u32 %s2534_s3, 4  ;;  %s2417_s14 = smov [#allocation10]   ;;  %s2642_s7 = int_to_ptr.hbm [resolvable:$true] %s183_s7 }
  0x7e   :  { %s155_s9 = sshll.u32 %s2417_s14, 4  ;;  %s2245_s13 = sshra.s32 %s2632_s26, 4  ;;  %s156_s9 = int_to_ptr.vmem [resolvable:$true] %s155_s9  ;;  %s2246_s13 = int_to_ptr.hbm [resolvable:$true] %s2245_s13 }
  0x7f   :  { %s2247_s11 = scalar_lea.hbm %s2246_s13, 32  ;;  %s2249_s16 = scalar_lea.hbm %s2514_s27, 32 }
  0x80   :  { %p2248_p2 = scmp.ne.s32.totalorder %s2246_s13, %s2247_s11  ;;  %p2250_p3 = scmp.lt.s32.totalorder %s2246_s13, %s2514_s27 }
  0x81   :  { %p2251_p4 = scmp.lt.s32.totalorder %s2249_s16, %s2247_s11 }
  0x83   :  { %p2252_p5 = por %p2251_p4, %p2250_p3 }
  0x85   :  { %p2253_p6 = pnand %p2252_p5, %p2248_p2 }
  0x87   :  { %2256 = shalt.err (!%p2253_p6)
}
  0x88   :  { %161 = dma.hbm_to_vmem [thread:$0]  %s2632_s26, 512, %s156_s9, [#allocation9], %s2410_s28, %s2410_s28, %s2411_s1  }
  0x89   :  { %s2418_s10 = smov [#allocation13]   ;;  %s213_s4 = sshll.u32 %s2554_s20, 4  ;;  %s2652_s4 = int_to_ptr.hbm [resolvable:$true] %s213_s4 }
  0x8a   :  { %s185_s18 = sshll.u32 %s2418_s10, 4  ;;  %s2269_s27 = sshra.s32 %s2642_s7, 4  ;;  %s186_s18 = int_to_ptr.vmem [resolvable:$true] %s185_s18  ;;  %s2270_s27 = int_to_ptr.hbm [resolvable:$true] %s2269_s27 }
  0x8b   :  { %s2271_s23 = scalar_lea.hbm %s2270_s27, 32  ;;  %s2273_s0 = scalar_lea.hbm %s2534_s3, 32 }
  0x8c   :  { %p2272_p7 = scmp.ne.s32.totalorder %s2270_s27, %s2271_s23  ;;  %p2274_p8 = scmp.lt.s32.totalorder %s2270_s27, %s2534_s3 }
  0x8d   :  { %p2275_p9 = scmp.lt.s32.totalorder %s2273_s0, %s2271_s23 }
  0x8f   :  { %p2276_p10 = por %p2275_p9, %p2274_p8 }
  0x91   :  { %p2277_p11 = pnand %p2276_p10, %p2272_p7 }
  0x93   :  { %2280 = shalt.err (!%p2277_p11)
}
  0x94   :  { %191 = dma.hbm_to_vmem [thread:$0]  %s2642_s7, 512, %s186_s18, [#allocation12], %s2410_s28, %s2410_s28, %s2411_s1  }
  0x95   :  { %s228_s15 = sshll.u32 %s2564_s24, 4  ;;  %s2419_s17 = smov [#allocation16]   ;;  %s2662_s15 = int_to_ptr.hbm [resolvable:$true] %s228_s15 }
  0x96   :  { %s215_s26 = sshll.u32 %s2419_s17, 4  ;;  %s2293_s3 = sshra.s32 %s2652_s4, 4  ;;  %s216_s26 = int_to_ptr.vmem [resolvable:$true] %s215_s26  ;;  %s2294_s3 = int_to_ptr.hbm [resolvable:$true] %s2293_s3 }
  0x97   :  { %s2295_s5 = scalar_lea.hbm %s2294_s3, 32  ;;  %s2297_s22 = scalar_lea.hbm %s2554_s20, 32 }
  0x98   :  { %p2296_p12 = scmp.ne.s32.totalorder %s2294_s3, %s2295_s5  ;;  %p2298_p13 = scmp.lt.s32.totalorder %s2294_s3, %s2554_s20 }
  0x99   :  { %p2299_p0 = scmp.lt.s32.totalorder %s2297_s22, %s2295_s5 }
  0x9b   :  { %p2300_p1 = por %p2299_p0, %p2298_p13 }
  0x9d   :  { %p2301_p2 = pnand %p2300_p1, %p2296_p12 }
  0x9f   :  { %2304 = shalt.err (!%p2301_p2)
}
  0xa0   :  { %221 = dma.hbm_to_vmem [thread:$0]  %s2652_s4, 512, %s216_s26, [#allocation15], %s2410_s28, %s2410_s28, %s2411_s1  }
  0xa1   :  { %s2420_s2 = smov [#allocation17]   ;;  %s2317_s14 = sshra.s32 %s2662_s15, 4  ;;  %s2318_s14 = int_to_ptr.hbm [resolvable:$true] %s2317_s14 }
  0xa2   :  { %s230_s7 = sshll.u32 %s2420_s2, 4  ;;  %s2319_s9 = scalar_lea.hbm %s2318_s14, 32  ;;  %s231_s7 = int_to_ptr.vmem [resolvable:$true] %s230_s7 }
  0xa3   :  { %p2320_p3 = scmp.ne.s32.totalorder %s2318_s14, %s2319_s9  ;;  %s2321_s20 = scalar_lea.hbm %s2564_s24, 32 }
  0xa4   :  { %p2322_p4 = scmp.lt.s32.totalorder %s2318_s14, %s2564_s24  ;;  %p2323_p5 = scmp.lt.s32.totalorder %s2321_s20, %s2319_s9 }
  0xa6   :  { %p2324_p6 = por %p2323_p5, %p2322_p4 }
  0xa8   :  { %p2325_p7 = pnand %p2324_p6, %p2320_p3 }
  0xaa   :  { %2328 = shalt.err (!%p2325_p7)
}
  0xab   :  { %236 = dma.hbm_to_vmem [thread:$0]  %s2662_s15, 512, %s231_s7, [#allocation18], %s2410_s28, %s2410_s28, %s2411_s1  }
  0xac   :  { %2365 = dma.done.wait [#allocation3], 256  }
  0xad   :  { %2366 = vsyncadd [#allocation3], 4294967040 }
  0xae   :  { %2367 = dma.done.wait [#allocation6], 512  }
  0xaf   :  { %2368 = vsyncadd [#allocation6], 4294966784 }
  0xb0   :  { %2369 = dma.done.wait [#allocation9], 768  }
  0xb1   :  { %2370 = vsyncadd [#allocation9], 4294966528 }
  0xb2   :  { %2371 = dma.done.wait [#allocation12], 1024  }
  0xb3   :  { %2372 = vsyncadd [#allocation12], 4294966272 }
  0xb4   :  { %2373 = dma.done.wait [#allocation15], 1024  }
  0xb5   :  { %2374 = vsyncadd [#allocation15], 4294966272 }
  0xb6   :  { %2375 = dma.done.wait [#allocation18], 512  }
  0xb7   :  { %2376 = vsyncadd [#allocation18], 4294966784  ;;  %vm297_vm0 = vcmask 261120   ;;  %v2678_v0 = vld [vmem:[#allocation2] sm:$0xff]  ;;  %v2682_v2 = vld [vmem:[#allocation2 + $0x8] sm:$0xff]  ;;  %v2421_v4 = vmov 32.0  }
  0xb8   :  { %v298_v1 = vsel %vm297_vm0, %v2678_v0, 0.0  ;;  %v301_v3 = vsel %vm297_vm0, %v2682_v2, 0.0  ;;  %2023 = vrcp.f32 %v2421_v4  ;;  %v362_v21 = vld [vmem:[%s2484_s19 + $0x18] sm:$0xff]  ;;  %v361_v24 = vld [vmem:[%s2484_s19 + $0x10] sm:$0xff]  ;;  %v360_v27 = vld [vmem:[%s2484_s19 + $0x8] sm:$0xff]  ;;  %s3017_s24 = sld [smem:[#allocation27_spill]] }
  0xb9   :  { %299 = vadd.xlane.f32.xlu0 %v298_v1  ;;  %v367_v22 = vld [vmem:[%s2494_s30 + $0x18] sm:$0xff]  ;;  %400 = vmatpush.msra.mxu0 %v362_v21  ;;  %v366_v25 = vld [vmem:[%s2494_s30 + $0x10] sm:$0xff]  ;;  %v365_v28 = vld [vmem:[%s2494_s30 + $0x8] sm:$0xff]  ;;  %vm463_vm8 = vcmask 64512   ;;  %vm501_vm10 = vcmask 130048   ;;  %s2423_s13 = smov 112  }
  0xba   :  { %v372_v23 = vld [vmem:[%s2504_s12 + $0x18] sm:$0xff]  ;;  %426 = vmatpush.msra.mxu1 %v367_v22  ;;  %v371_v26 = vld [vmem:[%s2504_s12 + $0x10] sm:$0xff]  ;;  %v370_v29 = vld [vmem:[%s2504_s12 + $0x8] sm:$0xff]  ;;  %s2424_s11 = smov 104   ;;  %s3021_s16 = sld [smem:[#allocation35_spill]] }
  0xbb   :  { %452 = vmatpush.msra.mxu2 %v372_v23  ;;  %401 = vmatpush.msra.mxu0 %v361_v24  ;;  %v359_v30 = vld [vmem:[%s2484_s19] sm:$0xff]  ;;  %s3018_s19 = sld [smem:[#allocation33_spill]]  ;;  %s1802_s26 = sshll.u32 %s2584_s25, 4  ;;  %s1803_s26 = int_to_ptr.hbm [resolvable:$true] %s1802_s26 }
  0xbc   :  { %427 = vmatpush.msra.mxu1 %v366_v25  ;;  %v364_v31 = vld [vmem:[%s2494_s30] sm:$0xff]  ;;  %s3020_s30 = sld [smem:[#allocation34_spill]]  ;;  %s2357_s5 = scalar_lea.hbm %s2584_s25, 16 }
  0xbd   :  { %453 = vmatpush.msra.mxu2 %v371_v26  ;;  %402 = vmatpush.msra.mxu0 %v360_v27  ;;  %v369_v32 = vld [vmem:[%s2504_s12] sm:$0xff]  ;;  %s2422_s12 = smov 120   ;;  %s3022_s10 = sld [smem:[#allocation28_spill]] }
  0xbe   :  { %v2024_v5 = vpop.eup %2023  ;;  %428 = vmatpush.msra.mxu1 %v365_v28  ;;  %v2007_v47 = vld [vmem:[%s2454_s21] ss:$0 sm:$0xff]  ;;  %s3019_s21 = sld [smem:[#allocation32_spill]] }
  0xbf   :  { %v305_v6 = vmul.f32 32.0, %v2024_v5  ;;  %vm309_vm1 = vweird.f32 %v2024_v5  ;;  %454 = vmatpush.msra.mxu2 %v370_v29  ;;  %403 = vmatpush.msra.mxu0 %v359_v30  ;;  %v2008_v51 = vld [vmem:[%s3017_s24] ss:$0 sm:$0xff]  ;;  %s3023_s18 = sld [smem:[#allocation29_spill]] }
  0xc0   :  { %429 = vmatpush.msra.mxu1 %v364_v31  ;;  %s3024_s4 = sld [smem:[#allocation37_spill]] }
  0xc1   :  { %302 = vadd.xlane.f32.xlu0 %v301_v3  ;;  %v306_v7 = vsub.f32 1.0, %v305_v6  ;;  %455 = vmatpush.msra.mxu2 %v369_v32  ;;  %v2010_v62 = vld [vmem:[%s3018_s19] ss:$0 sm:$0xff]  ;;  %s3025_s27 = sld [smem:[#allocation36_spill]] }
  0xc2   :  { %v2011_v6 = vld [vmem:[%s3020_s30] ss:$0 sm:$0xff]  ;;  %s3026_s23 = sld [smem:[#allocation38_spill]] }
  0xc3   :  { %v307_v8 = vmul.f32 %v2024_v5, %v306_v7  ;;  %s3027_s0 = sld [smem:[#allocation39_spill]] }
  0xc4   :  { %s3028_s15 = sld [smem:[#allocation30_spill]] }
  0xc5   :  { %v308_v9 = vadd.f32 %v2024_v5, %v307_v8  ;;  %s3029_s17 = sld [smem:[#allocation31_spill]] }
  0xc7   :  { %v2686_v10 = vsel %vm309_vm1, %v2024_v5, %v308_v9  ;;  %v2009_v5 = vld [vmem:[%s3019_s21] ss:$0 sm:$0xff] }
 0x12c   :  { %v300_v11 = vpop.xlane.xlu0 %299 }
 0x12d   :  { %v311_v12 = vmul.f32 %v2686_v10, %v300_v11 }
 0x12f   :  { %v313_v13 = vsub.f32 %v2678_v0, %v311_v12 }
 0x131   :  { %v315_v14 = vmul.f32 %v313_v13, %v313_v13 }
 0x133   :  { %v317_v15 = vsel %vm297_vm0, %v315_v14, 0.0 }
 0x134   :  { %318 = vadd.xlane.f32.xlu1 %v317_v15  ;;  %v303_v16 = vpop.xlane.xlu0 %302 }
 0x135   :  { %v312_v17 = vmul.f32 %v2686_v10, %v303_v16  ;;  %v2730_v16 = vld [vmem:[#allocation7] sm:$0xff] }
 0x136   :  { %vm289_vm9 = vcmp.gt.f32.partialorder %v2730_v16, 0.5 }
 0x137   :  { %v2693_v18 = vsub.f32 %v2682_v2, %v312_v17 }
 0x139   :  { %v316_v19 = vmul.f32 %v2693_v18, %v2693_v18 }
 0x13b   :  { %v320_v20 = vsel %vm297_vm0, %v316_v19, 0.0 }
 0x13c   :  { %321 = vadd.xlane.f32.xlu1 %v320_v20  ;;  %v2736_v20 = vld [vmem:[#allocation7 + $0x8] sm:$0xff] }
 0x13d   :  { %vm290_vm11 = vcmp.gt.f32.partialorder %v2736_v20, 0.5 }
 0x1a7   :  { %v319_v33 = vpop.xlane.xlu1 %318 }
 0x1a8   :  { %v323_v34 = vmul.f32 %v319_v33, %v2686_v10 }
 0x1aa   :  { %v325_v35 = vadd.f32 1e-05, %v323_v34 }
 0x1ac   :  { %2025 = vrsqrt.f32 %v325_v35  ;;  %vm333_vm3 = vweird.f32 %v325_v35 }
 0x1af   :  { %v322_v36 = vpop.xlane.xlu1 %321 }
 0x1b0   :  { %v324_v37 = vmul.f32 %v322_v36, %v2686_v10  ;;  %v374_v36 = vld [vmem:[#allocation10] sm:$0xff] }
 0x1b2   :  { %v2026_v38 = vpop.eup %2025  ;;  %v326_v39 = vadd.f32 1e-05, %v324_v37 }
 0x1b3   :  { %v328_v40 = vmul.f32 %v2026_v38, %v325_v35  ;;  %vm334_vm2 = vweird.f32 %v2026_v38 }
 0x1b4   :  { %2027 = vrsqrt.f32 %v326_v39  ;;  %vm335_vm4 = vmor %vm333_vm3, %vm334_vm2  ;;  %vm343_vm6 = vweird.f32 %v326_v39 }
 0x1b5   :  { %v329_v41 = vmul.f32 %v2026_v38, %v328_v40 }
 0x1b7   :  { %v330_v42 = vmul.f32 0.5, %v329_v41 }
 0x1b9   :  { %v331_v43 = vsub.f32 1.5, %v330_v42 }
 0x1ba   :  { %v2028_v44 = vpop.eup %2027 }
 0x1bb   :  { %v332_v45 = vmul.f32 %v2026_v38, %v331_v43  ;;  %v338_v46 = vmul.f32 %v2028_v44, %v326_v39  ;;  %vm344_vm5 = vweird.f32 %v2028_v44 }
 0x1bc   :  { %vm345_vm7 = vmor %vm343_vm6, %vm344_vm5 }
 0x1bd   :  { %v336_v48 = vsel %vm335_vm4, %v2026_v38, %v332_v45  ;;  %v339_v49 = vmul.f32 %v2028_v44, %v338_v46 }
 0x1be   :  { %v347_v50 = vmul.f32 %v336_v48, %v313_v13 }
 0x1bf   :  { %v340_v52 = vmul.f32 0.5, %v339_v49 }
 0x1c0   :  { %v352_v53 = vmul.f32 %v2007_v47, %v347_v50 }
 0x1c1   :  { %v341_v54 = vsub.f32 1.5, %v340_v52 }
 0x1c2   :  { %v357_v55 = vadd.f32 %v2008_v51, %v352_v53 }
 0x1c3   :  { %v342_v56 = vmul.f32 %v2028_v44, %v341_v54 }
 0x1c4   :  { %1850 = vmatmul.msk.f32.vlgmr.msra.gmra.mxu0 %vm297_vm0, %v357_v55  ;;  %1852 = vmatmul.msk.f32.vlgmr.msra.gmra.mxu1 %vm297_vm0, %v357_v55 }
 0x1c5   :  { %v346_v57 = vsel %vm345_vm7, %v2028_v44, %v342_v56  ;;  %1854 = vmatmul.msk.f32.vlgmr.msra.gmra.mxu2 %vm297_vm0, %v357_v55 }
 0x1c6   :  { %v348_v58 = vmul.f32 %v346_v57, %v2693_v18 }
 0x1c8   :  { %v353_v59 = vmul.f32 %v2007_v47, %v348_v58 }
 0x1ca   :  { %v358_v60 = vadd.f32 %v2008_v51, %v353_v59 }
 0x1cc   :  { %1851 = vmatmul.msk.f32.gmra.mxu0 %vm297_vm0, %v358_v60  ;;  %1853 = vmatmul.msk.f32.gmra.mxu1 %vm297_vm0, %v358_v60 }
 0x1cd   :  { %1855 = vmatmul.msk.f32.gmra.mxu2 %vm297_vm0, %v358_v60 }
 0x241   :  { %v431_v61 = vpop.f32.mrf.mxu1  ;;  %v405_v4 = vpop.f32.mrf.mxu0 }
 0x242   :  { %v432_v7 = vadd.f32 %v2010_v62, %v431_v61  ;;  %v406_v9 = vadd.f32 %v2009_v5, %v405_v4 }
 0x248   :  { %v457_v63 = vpop.f32.mrf.mxu2 }
 0x249   :  { %v434_v1 = vpop.f32.mrf.mxu1  ;;  %v458_v11 = vadd.f32 %v2011_v6, %v457_v63  ;;  %v408_v14 = vpop.f32.mrf.mxu0 }
 0x24a   :  { %v435_v3 = vadd.f32 %v2010_v62, %v434_v1  ;;  %v409_v15 = vadd.f32 %v2009_v5, %v408_v14 }
 0x24c   :  { %1856 = vmatpush.xpose.msk.msra.mxu3 %vm463_vm8, %v435_v3 }
 0x250   :  { %v460_v8 = vpop.f32.mrf.mxu2  ;;  %1857 = vmatpush.xpose.msk.msra.mxu3 %vm463_vm8, %v432_v7 }
 0x251   :  { %v461_v12 = vadd.f32 %v2011_v6, %v460_v8 }
 0x253   :  { %544 = vmatpush.msrb.mxu0 %v461_v12  ;;  %1858 = vmatmul.msk.f32.vlgmr.msra.gmra.mxu3 %vm463_vm8, %v406_v9  ;;  %v2727_v13 = vpack.i.bf16 %v458_v11, %v461_v12 }
 0x255   :  { %545 = vmatpush.msrb.mxu0 %v458_v11 }
 0x257   :  { %703 = vmatpush.msra.mxu0 %v374_v36 }
 0x25b   :  { %1859 = vmatmul.msk.f32.gmra.mxu3 %vm463_vm8, %v409_v15 }
 0x2d6   :  { %v493_v17 = vpop.f32.mrf.mxu3 }
 0x2d7   :  { %v499_v18 = vsel %vm289_vm9, %v493_v17, -1e+09 }
 0x2d8   :  { %v502_v19 = vsel %vm501_vm10, %v499_v18, -inf }
 0x2d9   :  { %503 = vmax.xlane.f32.xlu2 %v502_v19 }
 0x2de   :  { %v496_v21 = vpop.f32.mrf.mxu3 }
 0x2df   :  { %v500_v22 = vsel %vm290_vm11, %v496_v21, -1e+09 }
 0x2e0   :  { %v505_v23 = vsel %vm501_vm10, %v500_v22, -inf }
 0x2e1   :  { %506 = vmax.xlane.f32.xlu2 %v505_v23 }
 0x2f9   :  { %559 = vrot.lane.b32.xlu2 %v435_v3, %s2422_s12 }
 0x301   :  { %555 = vrot.lane.b32.xlu2 %v409_v15, %s2422_s12 }
 0x309   :  { %715 = vrot.lane.b32.xlu2 %v432_v7, %s2423_s13 }
 0x311   :  { %844 = vrot.lane.b32.xlu2 %v432_v7, %s2424_s11 }
 0x319   :  { %842 = vrot.lane.b32.xlu2 %v409_v15, %s2424_s11 }
 0x34c   :  { %v504_v24 = vpop.xlane.xlu2 %503 }
 0x34d   :  { %v508_v25 = vsub.f32 %v499_v18, %v504_v24 }
 0x34f   :  { %v510_v26 = vmul.f32 1.442695, %v508_v25 }
 0x351   :  { %2029 = vpow2.f32 %v510_v26 }
 0x354   :  { %v507_v27 = vpop.xlane.xlu2 %506 }
 0x355   :  { %v509_v28 = vsub.f32 %v500_v22, %v507_v27 }
 0x357   :  { %v2030_v29 = vpop.eup %2029  ;;  %v512_v30 = vmul.f32 1.442695, %v509_v28 }
 0x358   :  { %v514_v31 = vsel %vm501_vm10, %v2030_v29, 0.0 }
 0x359   :  { %2031 = vpow2.f32 %v512_v30  ;;  %515 = vadd.xlane.f32.xlu0 %v514_v31 }
 0x35c   :  { %v560_v32 = vpop.permute.xlu2 %559 }
 0x35d   :  { %1862 = vmatpush.xpose.msk.msrb.mxu1 %vm463_vm8, %v560_v32 }
 0x35f   :  { %v2032_v33 = vpop.eup %2031 }
 0x360   :  { %v517_v34 = vsel %vm501_vm10, %v2032_v33, 0.0 }
 0x361   :  { %518 = vadd.xlane.f32.xlu1 %v517_v34 }
 0x364   :  { %v556_v42 = vpop.permute.xlu2 %555 }
 0x36c   :  { %v716_v45 = vpop.permute.xlu2 %715 }
 0x36d   :  { %557 = vrot.lane.b32.xlu0 %v432_v7, %s2422_s12 }
 0x374   :  { %v845_v48 = vpop.permute.xlu2 %844 }
 0x375   :  { %717 = vrot.lane.b32.xlu0 %v435_v3, %s2423_s13 }
 0x37a   :  { %553 = vrot.lane.b32.xlu1 %v406_v9, %s2422_s12 }
 0x37c   :  { %v843_v55 = vpop.permute.xlu2 %842 }
 0x37d   :  { %846 = vrot.lane.b32.xlu0 %v435_v3, %s2424_s11 }
 0x382   :  { %711 = vrot.lane.b32.xlu1 %v406_v9, %s2423_s13 }
 0x385   :  { %840 = vrot.lane.b32.xlu0 %v406_v9, %s2424_s11 }
 0x38a   :  { %713 = vrot.lane.b32.xlu1 %v409_v15, %s2423_s13 }
 0x3cc   :  { %v516_v35 = vpop.xlane.xlu0 %515 }
 0x3cd   :  { %2033 = vrcp.f32 %v516_v35 }
 0x3d3   :  { %v2034_v37 = vpop.eup %2033 }
 0x3d4   :  { %v519_v38 = vpop.xlane.xlu1 %518  ;;  %v522_v39 = vmul.f32 %v2034_v37, %v2030_v29 }
 0x3d5   :  { %2035 = vrcp.f32 %v519_v38 }
 0x3d6   :  { %1860 = vmatmul.msk.f32.vlgmr.msrb.gmra.mxu0 %vm501_vm10, %v522_v39 }
 0x3db   :  { %v2036_v40 = vpop.eup %2035 }
 0x3dc   :  { %v523_v41 = vmul.f32 %v2036_v40, %v2032_v33 }
 0x3de   :  { %1861 = vmatmul.msk.f32.gmra.mxu0 %vm501_vm10, %v523_v41 }
 0x3df   :  { %v558_v43 = vpop.permute.xlu0 %557 }
 0x3e0   :  { %1863 = vmatpush.xpose.msk.msrb.mxu1 %vm463_vm8, %v558_v43 }
 0x3e7   :  { %v718_v44 = vpop.permute.xlu0 %717 }
 0x3e8   :  { %1872 = vmatpush.xpose.msk.msra.mxu1 %vm463_vm8, %v718_v44 }
 0x3ec   :  { %v554_v46 = vpop.permute.xlu1 %553  ;;  %1873 = vmatpush.xpose.msk.msra.mxu1 %vm463_vm8, %v716_v45 }
 0x3ed   :  { %1864 = vmatmul.msk.f32.vlgmr.msrb.gmra.mxu1 %vm463_vm8, %v554_v46 }
 0x3ef   :  { %v847_v47 = vpop.permute.xlu0 %846 }
 0x3f0   :  { %1880 = vmatpush.xpose.msk.msrb.mxu0 %vm463_vm8, %v847_v47 }
 0x3f4   :  { %1881 = vmatpush.xpose.msk.msrb.mxu0 %vm463_vm8, %v845_v48  ;;  %v712_v49 = vpop.permute.xlu1 %711 }
 0x3f5   :  { %1865 = vmatmul.msk.f32.gmra.mxu1 %vm463_vm8, %v556_v42 }
 0x3f7   :  { %v841_v53 = vpop.permute.xlu0 %840 }
 0x3fc   :  { %v714_v50 = vpop.permute.xlu1 %713 }
 0x3fd   :  { %1874 = vmatmul.msk.f32.vlgmr.msra.gmra.mxu1 %vm463_vm8, %v712_v49 }
 0x405   :  { %1875 = vmatmul.msk.f32.gmra.mxu1 %vm463_vm8, %v714_v50 }
 0x453   :  { %v547_v51 = vpop.f32.mrf.mxu0 }
 0x454   :  { %1870 = vmatmul.msk.f32.vlgmr.msra.gmra.mxu0 %vm463_vm8, %v547_v51 }
 0x45b   :  { %v550_v52 = vpop.f32.mrf.mxu0 }
 0x45c   :  { %1871 = vmatmul.msk.f32.gmra.mxu0 %vm463_vm8, %v550_v52 }
 0x464   :  { %1882 = vmatmul.msk.f32.vlgmr.msrb.gmra.mxu0 %vm463_vm8, %v841_v53 }
 0x46a   :  { %v586_v54 = vpop.f32.mrf.mxu1 }
 0x46b   :  { %v592_v56 = vsel %vm289_vm9, %v586_v54, -1e+09 }
 0x46c   :  { %1883 = vmatmul.msk.f32.gmra.mxu0 %vm463_vm8, %v843_v55  ;;  %v594_v57 = vsel %vm501_vm10, %v592_v56, -inf }
 0x46d   :  { %595 = vmax.xlane.f32.xlu1 %v594_v57 }
 0x472   :  { %v589_v58 = vpop.f32.mrf.mxu1 }
 0x473   :  { %v593_v59 = vsel %vm290_vm11, %v589_v58, -1e+09 }
 0x474   :  { %v597_v60 = vsel %vm501_vm10, %v593_v59, -inf }
 0x475   :  { %598 = vmax.xlane.f32.xlu0 %v597_v60 }
 0x47a   :  { %v744_v61 = vpop.f32.mrf.mxu1 }
 0x47b   :  { %v750_v62 = vsel %vm289_vm9, %v744_v61, -1e+09 }
 0x47c   :  { %v752_v63 = vsel %vm501_vm10, %v750_v62, -inf }
 0x47d   :  { %753 = vmax.xlane.f32.xlu2 %v752_v63 }
 0x482   :  { %v747_v1 = vpop.f32.mrf.mxu1 }
 0x483   :  { %v751_v3 = vsel %vm290_vm11, %v747_v1, -1e+09 }
 0x484   :  { %v755_v4 = vsel %vm501_vm10, %v751_v3, -inf }
 0x485   :  { %756 = vmax.xlane.f32.xlu1 %v755_v4 }
 0x4d1   :  { %v2784_v5 = vpop.f32.mrf.mxu0 }
 0x4d9   :  { %v2786_v6 = vpop.f32.mrf.mxu0 }
 0x4e0   :  { %v596_v7 = vpop.xlane.xlu1 %595 }
 0x4e1   :  { %v600_v8 = vsub.f32 %v592_v56, %v596_v7  ;;  %v873_v9 = vpop.f32.mrf.mxu0 }
 0x4e2   :  { %v879_v11 = vsel %vm289_vm9, %v873_v9, -1e+09  ;;  %v376_v9 = vld [vmem:[#allocation10 + $0x10] sm:$0xff] }
 0x4e3   :  { %v602_v12 = vmul.f32 1.442695, %v600_v8  ;;  %v881_v14 = vsel %vm501_vm10, %v879_v11, -inf }
 0x4e4   :  { %882 = vmax.xlane.f32.xlu0 %v881_v14 }
 0x4e5   :  { %2037 = vpow2.f32 %v602_v12 }
 0x4e8   :  { %v599_v15 = vpop.xlane.xlu0 %598 }
 0x4e9   :  { %v601_v17 = vsub.f32 %v593_v59, %v599_v15  ;;  %v876_v26 = vpop.f32.mrf.mxu0 }
 0x4ea   :  { %v880_v28 = vsel %vm290_vm11, %v876_v26, -1e+09  ;;  %vm1756_vm11 = vcmask 523264  }
 0x4eb   :  { %v2038_v18 = vpop.eup %2037  ;;  %v604_v19 = vmul.f32 1.442695, %v601_v17  ;;  %v884_v32 = vsel %vm501_vm10, %v880_v28, -inf }
 0x4ec   :  { %v606_v21 = vsel %vm501_vm10, %v2038_v18, 0.0 }
 0x4ed   :  { %2039 = vpow2.f32 %v604_v19  ;;  %607 = vadd.xlane.f32.xlu1 %v606_v21  ;;  %v377_v21 = vld [vmem:[#allocation10 + $0x18] sm:$0xff] }
 0x4f0   :  { %v754_v22 = vpop.xlane.xlu2 %753 }
 0x4f1   :  { %v758_v23 = vsub.f32 %v750_v62, %v754_v22 }
 0x4f3   :  { %v2040_v24 = vpop.eup %2039  ;;  %v760_v25 = vmul.f32 1.442695, %v758_v23 }
 0x4f4   :  { %v609_v16 = vsel %vm501_vm10, %v2040_v24, 0.0 }
 0x4f5   :  { %2041 = vpow2.f32 %v760_v25  ;;  %610 = vadd.xlane.f32.xlu2 %v609_v16 }
 0x4f8   :  { %v757_v27 = vpop.xlane.xlu1 %756  ;;  %1978 = vrot.lane.b32.xlu0 %v2727_v13, %s2422_s12 }
 0x4f9   :  { %v759_v29 = vsub.f32 %v751_v3, %v757_v27  ;;  %v375_v3 = vld [vmem:[#allocation10 + $0x8] sm:$0xff] }
 0x4fa   :  { %674 = vmatpush.msrb.mxu3 %v375_v3  ;;  %v2013_v3 = vld [vmem:[%s3022_s10] ss:$0 sm:$0xff] }
 0x4fb   :  { %v2042_v30 = vpop.eup %2041  ;;  %v762_v31 = vmul.f32 1.442695, %v759_v29 }
 0x4fc   :  { %v764_v33 = vsel %vm501_vm10, %v2042_v30, 0.0  ;;  %830 = vmatpush.msra.mxu3 %v376_v9 }
 0x4fd   :  { %2043 = vpow2.f32 %v762_v31  ;;  %885 = vmax.xlane.f32.xlu2 %v884_v32  ;;  %765 = vadd.xlane.f32.xlu1 %v764_v33 }
 0x503   :  { %v2044_v34 = vpop.eup %2043 }
 0x504   :  { %v767_v35 = vsel %vm501_vm10, %v2044_v34, 0.0 }
 0x505   :  { %768 = vadd.xlane.f32.xlu1 %v767_v35 }
 0x515   :  { %1983 = vrot.lane.b32.xlu2 %v2727_v13, %s2423_s13 }
 0x51e   :  { %1988 = vrot.lane.b32.xlu1 %v2727_v13, %s2424_s11 }
 0x557   :  { %v883_v20 = vpop.xlane.xlu0 %882 }
 0x558   :  { %v887_v36 = vsub.f32 %v879_v11, %v883_v20 }
 0x55a   :  { %v889_v37 = vmul.f32 1.442695, %v887_v36 }
 0x55c   :  { %2045 = vpow2.f32 %v889_v37 }
 0x560   :  { %v608_v39 = vpop.xlane.xlu1 %607 }
 0x561   :  { %2047 = vrcp.f32 %v608_v39 }
 0x562   :  { %v2046_v38 = vpop.eup %2045 }
 0x563   :  { %v893_v40 = vsel %vm501_vm10, %v2046_v38, 0.0 }
 0x564   :  { %894 = vadd.xlane.f32.xlu0 %v893_v40 }
 0x567   :  { %v2048_v43 = vpop.eup %2047 }
 0x568   :  { %v611_v41 = vpop.xlane.xlu2 %610  ;;  %v614_v46 = vmul.f32 %v2048_v43, %v2038_v18 }
 0x569   :  { %2049 = vrcp.f32 %v611_v41 }
 0x56a   :  { %v1979_v42 = vpop.permute.xlu0 %1978 }
 0x56b   :  { %v1980_v44 = vunpack.i.l.bf16 %v1979_v42  ;;  %v1981_v45 = vunpack.i.h.bf16 %v1979_v42 }
 0x56d   :  { %644 = vmatpush.msrb.mxu2 %v1980_v44 }
 0x56f   :  { %645 = vmatpush.msrb.mxu2 %v1981_v45  ;;  %v2050_v49 = vpop.eup %2049 }
 0x570   :  { %1866 = vmatmul.msk.f32.vlgmr.msrb.gmra.mxu2 %vm501_vm10, %v614_v46  ;;  %v766_v13 = vpop.xlane.xlu1 %765  ;;  %v886_v47 = vpop.xlane.xlu2 %885  ;;  %v615_v51 = vmul.f32 %v2050_v49, %v2040_v24  ;;  %v1037_v49 = vld [vmem:[#allocation13] sm:$0xff] }
 0x571   :  { %v888_v48 = vsub.f32 %v880_v28, %v886_v47  ;;  %2051 = vrcp.f32 %v766_v13  ;;  %v2012_v28 = vld [vmem:[%s3021_s16] ss:$0 sm:$0xff]  ;;  %v1040_v13 = vld [vmem:[#allocation13 + $0x18] sm:$0xff]  ;;  %v1039_v47 = vld [vmem:[#allocation13 + $0x10] sm:$0xff] }
 0x572   :  { %1105 = vmatpush.msra.mxu0 %v1040_v13 }
 0x573   :  { %v891_v50 = vmul.f32 1.442695, %v888_v48  ;;  %v1038_v48 = vld [vmem:[#allocation13 + $0x8] sm:$0xff] }
 0x574   :  { %1106 = vmatpush.msra.mxu0 %v1039_v47 }
 0x575   :  { %2053 = vpow2.f32 %v891_v50  ;;  %v2837_v50 = vld [vmem:[#allocation5] sm:$0xff] }
 0x576   :  { %1107 = vmatpush.msra.mxu0 %v1038_v48 }
 0x577   :  { %v2052_v54 = vpop.eup %2051 }
 0x578   :  { %1867 = vmatmul.msk.f32.gmra.mxu2 %vm501_vm10, %v615_v51  ;;  %v1984_v52 = vpop.permute.xlu2 %1983  ;;  %v769_v55 = vpop.xlane.xlu1 %768  ;;  %v772_v59 = vmul.f32 %v2052_v54, %v2042_v30  ;;  %1108 = vmatpush.msra.mxu0 %v1037_v49  ;;  %v1035_v51 = vld [vmem:[#allocation11 + $0x18] sm:$0xff]  ;;  %v1033_v54 = vld [vmem:[#allocation11 + $0x8] sm:$0xff] }
 0x579   :  { %v1985_v53 = vunpack.i.l.bf16 %v1984_v52  ;;  %v1986_v57 = vunpack.i.h.bf16 %v1984_v52  ;;  %2055 = vrcp.f32 %v769_v55  ;;  %1890 = vmatmul.msk.f32.vlgmr.msra.gmra.mxu0 %vm297_vm0, %v2837_v50  ;;  %v1034_v52 = vld [vmem:[#allocation11 + $0x10] sm:$0xff]  ;;  %v1032_v55 = vld [vmem:[#allocation11] sm:$0xff] }
 0x57b   :  { %v2054_v56 = vpop.eup %2053  ;;  %800 = vmatpush.msra.mxu2 %v1985_v53  ;;  %v2841_v53 = vld [vmem:[#allocation5 + $0x8] sm:$0xff] }
 0x57c   :  { %v896_v58 = vsel %vm501_vm10, %v2054_v56, 0.0 }
 0x57d   :  { %897 = vadd.xlane.f32.xlu2 %v896_v58  ;;  %801 = vmatpush.msra.mxu2 %v1986_v57 }
 0x57f   :  { %v2056_v60 = vpop.eup %2055  ;;  %959 = vmatpush.msrb.mxu2 %v377_v21 }
 0x580   :  { %1876 = vmatmul.msk.f32.vlgmr.msra.gmra.mxu2 %vm501_vm10, %v772_v59  ;;  %v773_v61 = vmul.f32 %v2056_v60, %v2044_v34 }
 0x581   :  { %1891 = vmatmul.msk.f32.gmra.mxu0 %vm297_vm0, %v2841_v53 }
 0x588   :  { %1877 = vmatmul.msk.f32.gmra.mxu2 %vm501_vm10, %v773_v61 }
 0x590   :  { %v1989_v62 = vpop.permute.xlu1 %1988 }
 0x591   :  { %v1990_v63 = vunpack.i.l.bf16 %v1989_v62  ;;  %v1991_v1 = vunpack.i.h.bf16 %v1989_v62 }
 0x593   :  { %929 = vmatpush.msrb.mxu1 %v1990_v63 }
 0x595   :  { %930 = vmatpush.msrb.mxu1 %v1991_v1 }
 0x5d7   :  { %v895_v4 = vpop.xlane.xlu0 %894 }
 0x5d8   :  { %2057 = vrcp.f32 %v895_v4 }
 0x5de   :  { %v2058_v7 = vpop.eup %2057 }
 0x5df   :  { %v901_v8 = vmul.f32 %v2058_v7, %v2046_v38 }
 0x5e1   :  { %1884 = vmatmul.msk.f32.vlgmr.msrb.gmra.mxu1 %vm501_vm10, %v901_v8  ;;  %v2014_v8 = vld [vmem:[%s3023_s18] ss:$0 sm:$0xff] }
 0x5f0   :  { %v898_v11 = vpop.xlane.xlu2 %897 }
 0x5f1   :  { %2059 = vrcp.f32 %v898_v11 }
 0x5f3   :  { %v647_v12 = vpop.f32.mrf.mxu2 }
 0x5f4   :  { %1868 = vmatmul.msk.f32.vlgmr.msrb.gmra.mxu3 %vm463_vm8, %v647_v12 }
 0x5f5   :  { %1073 = vmatpush.msrb.mxu3 %v1035_v51 }
 0x5f7   :  { %v2060_v14 = vpop.eup %2059  ;;  %1074 = vmatpush.msrb.mxu3 %v1034_v52 }
 0x5f8   :  { %v902_v15 = vmul.f32 %v2060_v14, %v2054_v56 }
 0x5f9   :  { %1075 = vmatpush.msrb.mxu3 %v1033_v54 }
 0x5fa   :  { %1885 = vmatmul.msk.f32.gmra.mxu1 %vm501_vm10, %v902_v15 }
 0x5fb   :  { %v650_v17 = vpop.f32.mrf.mxu2  ;;  %1076 = vmatpush.msrb.mxu3 %v1032_v55 }
 0x5fc   :  { %1869 = vmatmul.msk.f32.gmra.mxu3 %vm463_vm8, %v650_v17 }
 0x603   :  { %v803_v18 = vpop.f32.mrf.mxu2 }
 0x604   :  { %1878 = vmatmul.msk.f32.vlgmr.msra.gmra.mxu3 %vm463_vm8, %v803_v18 }
 0x60b   :  { %v806_v19 = vpop.f32.mrf.mxu2 }
 0x60c   :  { %1879 = vmatmul.msk.f32.gmra.mxu3 %vm463_vm8, %v806_v19 }
 0x65e   :  { %v932_v22 = vpop.f32.mrf.mxu1 }
 0x65f   :  { %1886 = vmatmul.msk.f32.vlgmr.msrb.gmra.mxu2 %vm463_vm8, %v932_v22 }
 0x677   :  { %v935_v23 = vpop.f32.mrf.mxu1  ;;  %v676_v24 = vpop.f32.mrf.mxu3 }
 0x678   :  { %1887 = vmatmul.msk.f32.gmra.mxu2 %vm463_vm8, %v935_v23  ;;  %v706_v26 = vadd.f32 %v2784_v5, %v676_v24 }
 0x67f   :  { %v679_v25 = vpop.f32.mrf.mxu3 }
 0x680   :  { %v709_v35 = vadd.f32 %v2786_v6, %v679_v25 }
 0x687   :  { %v832_v16 = vpop.f32.mrf.mxu3 }
 0x688   :  { %v838_v27 = vadd.f32 %v832_v16, %v706_v26 }
 0x68f   :  { %v835_v34 = vpop.f32.mrf.mxu3 }
 0x690   :  { %v839_v20 = vadd.f32 %v835_v34, %v709_v35 }
 0x6e2   :  { %v961_v29 = vpop.f32.mrf.mxu2 }
 0x6e3   :  { %v967_v30 = vadd.f32 %v961_v29, %v838_v27  ;;  %v1110_v27 = vpop.f32.mrf.mxu0 }
 0x6e5   :  { %v972_v31 = vadd.f32 %v2012_v28, %v967_v30 }
 0x6e7   :  { %v2821_v32 = vadd.f32 %v972_v31, %v2678_v0 }
 0x6e9   :  { %v978_v33 = vsel %vm297_vm0, %v2821_v32, 0.0 }
 0x6ea   :  { %979 = vadd.xlane.f32.xlu1 %v978_v33  ;;  %v2016_v33 = vld [vmem:[%s3025_s27] ss:$0 sm:$0xff] }
 0x6eb   :  { %v1113_v29 = vpop.f32.mrf.mxu0 }
 0x6fb   :  { %v964_v36 = vpop.f32.mrf.mxu2 }
 0x6fc   :  { %v968_v37 = vadd.f32 %v964_v36, %v839_v20 }
 0x6fe   :  { %v973_v38 = vadd.f32 %v2012_v28, %v968_v37  ;;  %v2015_v28 = vld [vmem:[%s3024_s4] ss:$0 sm:$0xff]  ;;  %v2860_v37 = vld [vmem:[#allocation8] sm:$0xff] }
 0x6ff   :  { %v2852_v30 = vadd.f32 %v2015_v28, %v1113_v29  ;;  %v1111_v31 = vadd.f32 %v2015_v28, %v1110_v27  ;;  %vm293_vm3 = vcmp.gt.f32.partialorder %v2860_v37, 0.5 }
 0x700   :  { %v2827_v5 = vadd.f32 %v973_v38, %v2682_v2 }
 0x701   :  { %1894 = vmatpush.xpose.msk.msra.mxu2 %vm463_vm8, %v2852_v30 }
 0x702   :  { %v981_v39 = vsel %vm297_vm0, %v2827_v5, 0.0 }
 0x703   :  { %982 = vadd.xlane.f32.xlu0 %v981_v39 }
 0x705   :  { %1895 = vmatpush.xpose.msk.msra.mxu2 %vm463_vm8, %v1111_v31 }
 0x75d   :  { %v980_v0 = vpop.xlane.xlu1 %979 }
 0x75e   :  { %v984_v40 = vmul.f32 %v980_v0, %v2686_v10 }
 0x760   :  { %v986_v41 = vsub.f32 %v2821_v32, %v984_v40  ;;  %v2866_v40 = vld [vmem:[#allocation8 + $0x8] sm:$0xff] }
 0x761   :  { %vm294_vm4 = vcmp.gt.f32.partialorder %v2866_v40, 0.5 }
 0x762   :  { %v988_v42 = vmul.f32 %v986_v41, %v986_v41 }
 0x764   :  { %v990_v43 = vsel %vm297_vm0, %v988_v42, 0.0 }
 0x765   :  { %991 = vadd.xlane.f32.xlu0 %v990_v43 }
 0x776   :  { %v983_v6 = vpop.xlane.xlu0 %982 }
 0x777   :  { %v985_v44 = vmul.f32 %v983_v6, %v2686_v10  ;;  %v1045_v6 = vld [vmem:[#allocation14 + $0x18] sm:$0xff] }
 0x778   :  { %1131 = vmatpush.msra.mxu1 %v1045_v6 }
 0x779   :  { %v987_v45 = vsub.f32 %v2827_v5, %v985_v44  ;;  %v1044_v44 = vld [vmem:[#allocation14 + $0x10] sm:$0xff] }
 0x77a   :  { %1132 = vmatpush.msra.mxu1 %v1044_v44 }
 0x77b   :  { %v989_v2 = vmul.f32 %v987_v45, %v987_v45 }
 0x77d   :  { %v993_v46 = vsel %vm297_vm0, %v989_v2, 0.0  ;;  %v1042_v2 = vld [vmem:[#allocation14] sm:$0xff] }
 0x77e   :  { %994 = vadd.xlane.f32.xlu2 %v993_v46 }
 0x7d8   :  { %v992_v56 = vpop.xlane.xlu0 %991 }
 0x7d9   :  { %v996_v57 = vmul.f32 %v992_v56, %v2686_v10 }
 0x7db   :  { %v998_v58 = vadd.f32 1e-05, %v996_v57  ;;  %v2017_v57 = vld [vmem:[%s3026_s23] ss:$0 sm:$0xff] }
 0x7dd   :  { %2061 = vrsqrt.f32 %v998_v58  ;;  %vm1006_vm13 = vweird.f32 %v998_v58 }
 0x7e3   :  { %v2062_v59 = vpop.eup %2061 }
 0x7e4   :  { %v1001_v60 = vmul.f32 %v2062_v59, %v998_v58  ;;  %vm1007_vm12 = vweird.f32 %v2062_v59 }
 0x7e5   :  { %vm1008_vm14 = vmor %vm1006_vm13, %vm1007_vm12 }
 0x7e6   :  { %v1002_v61 = vmul.f32 %v2062_v59, %v1001_v60 }
 0x7e8   :  { %v1003_v62 = vmul.f32 0.5, %v1002_v61 }
 0x7ea   :  { %v1004_v63 = vsub.f32 1.5, %v1003_v62 }
 0x7ec   :  { %v1005_v1 = vmul.f32 %v2062_v59, %v1004_v63 }
 0x7ee   :  { %v1009_v4 = vsel %vm1008_vm14, %v2062_v59, %v1005_v1 }
 0x7ef   :  { %v1020_v7 = vmul.f32 %v1009_v4, %v986_v41 }
 0x7f1   :  { %v1025_v9 = vmul.f32 %v2013_v3, %v1020_v7  ;;  %v995_v11 = vpop.xlane.xlu2 %994 }
 0x7f2   :  { %v997_v12 = vmul.f32 %v995_v11, %v2686_v10 }
 0x7f3   :  { %v1030_v14 = vadd.f32 %v2014_v8, %v1025_v9 }
 0x7f4   :  { %v999_v15 = vadd.f32 1e-05, %v997_v12 }
 0x7f5   :  { %1888 = vmatmul.msk.f32.vlgmr.msrb.gmra.mxu3 %vm297_vm0, %v1030_v14 }
 0x7f6   :  { %2063 = vrsqrt.f32 %v999_v15  ;;  %vm1016_vm1 = vweird.f32 %v999_v15 }
 0x7fc   :  { %v2064_v17 = vpop.eup %2063 }
 0x7fd   :  { %v1011_v18 = vmul.f32 %v2064_v17, %v999_v15  ;;  %vm1017_vm15 = vweird.f32 %v2064_v17 }
 0x7fe   :  { %vm1018_vm2 = vmor %vm1016_vm1, %vm1017_vm15 }
 0x7ff   :  { %v1012_v19 = vmul.f32 %v2064_v17, %v1011_v18 }
 0x801   :  { %v1013_v21 = vmul.f32 0.5, %v1012_v19 }
 0x803   :  { %v1014_v22 = vsub.f32 1.5, %v1013_v21 }
 0x805   :  { %v1015_v23 = vmul.f32 %v2064_v17, %v1014_v22 }
 0x807   :  { %v1019_v24 = vsel %vm1018_vm2, %v2064_v17, %v1015_v23 }
 0x808   :  { %v1021_v25 = vmul.f32 %v1019_v24, %v987_v45  ;;  %v1043_v45 = vld [vmem:[#allocation14 + $0x8] sm:$0xff] }
 0x809   :  { %1133 = vmatpush.msra.mxu1 %v1043_v45 }
 0x80a   :  { %v1026_v16 = vmul.f32 %v2013_v3, %v1021_v25  ;;  %v1047_v3 = vld [vmem:[#allocation16] sm:$0xff] }
 0x80b   :  { %1134 = vmatpush.msra.mxu1 %v1042_v2 }
 0x80c   :  { %v1031_v26 = vadd.f32 %v2014_v8, %v1026_v16  ;;  %1892 = vmatmul.msk.f32.vlgmr.msra.gmra.mxu1 %vm297_vm0, %v2837_v50 }
 0x80e   :  { %1889 = vmatmul.msk.f32.gmra.mxu3 %vm297_vm0, %v1031_v26 }
 0x814   :  { %1893 = vmatmul.msk.f32.gmra.mxu1 %vm297_vm0, %v2841_v53 }
 0x878   :  { %v1078_v34 = vpop.f32.mrf.mxu3 }
 0x879   :  { %v1079_v35 = vadd.f32 %v2016_v33, %v1078_v34 }
 0x87b   :  { %1896 = vmatmul.msk.f32.vlgmr.msra.gmra.mxu2 %vm463_vm8, %v1079_v35 }
 0x889   :  { %v1136_v56 = vpop.f32.mrf.mxu1 }
 0x88a   :  { %v1137_v59 = vadd.f32 %v2017_v57, %v1136_v56 }
 0x891   :  { %v1081_v20 = vpop.f32.mrf.mxu3  ;;  %v1139_v58 = vpop.f32.mrf.mxu1 }
 0x892   :  { %v1082_v36 = vadd.f32 %v2016_v33, %v1081_v20  ;;  %v1140_v60 = vadd.f32 %v2017_v57, %v1139_v58 }
 0x894   :  { %1897 = vmatmul.msk.f32.gmra.mxu2 %vm463_vm8, %v1082_v36  ;;  %1221 = vmatpush.msra.mxu3 %v1140_v60  ;;  %v2895_v61 = vpack.i.bf16 %v1137_v59, %v1140_v60 }
 0x896   :  { %1222 = vmatpush.msra.mxu3 %v1137_v59 }
 0x898   :  { %1380 = vmatpush.msrb.mxu3 %v1047_v3 }
 0x8fe   :  { %v1171_v38 = vpop.f32.mrf.mxu2 }
 0x8ff   :  { %v1177_v39 = vsel %vm293_vm3, %v1171_v38, -1e+09 }
 0x900   :  { %v1179_v0 = vsel %vm501_vm10, %v1177_v39, -inf }
 0x901   :  { %1180 = vmax.xlane.f32.xlu0 %v1179_v0 }
 0x917   :  { %v1174_v41 = vpop.f32.mrf.mxu2 }
 0x918   :  { %v1178_v42 = vsel %vm294_vm4, %v1174_v41, -1e+09 }
 0x919   :  { %v1182_v43 = vsel %vm501_vm10, %v1178_v42, -inf }
 0x91a   :  { %1183 = vmax.xlane.f32.xlu2 %v1182_v43 }
 0x932   :  { %1236 = vrot.lane.b32.xlu2 %v2852_v30, %s2422_s12 }
 0x93a   :  { %1394 = vrot.lane.b32.xlu2 %v2852_v30, %s2423_s13 }
 0x942   :  { %1521 = vrot.lane.b32.xlu2 %v1111_v31, %s2424_s11 }
 0x94a   :  { %1390 = vrot.lane.b32.xlu2 %v1082_v36, %s2423_s13 }
 0x974   :  { %v1181_v46 = vpop.xlane.xlu0 %1180 }
 0x975   :  { %v1185_v13 = vsub.f32 %v1177_v39, %v1181_v46 }
 0x977   :  { %v1187_v47 = vmul.f32 1.442695, %v1185_v13 }
 0x979   :  { %2065 = vpow2.f32 %v1187_v47 }
 0x97f   :  { %v2066_v48 = vpop.eup %2065 }
 0x980   :  { %v1191_v49 = vsel %vm501_vm10, %v2066_v48, 0.0 }
 0x981   :  { %1192 = vadd.xlane.f32.xlu0 %v1191_v49 }
 0x98d   :  { %v1184_v50 = vpop.xlane.xlu2 %1183 }
 0x98e   :  { %v1186_v51 = vsub.f32 %v1178_v42, %v1184_v50 }
 0x990   :  { %v1189_v52 = vmul.f32 1.442695, %v1186_v51 }
 0x992   :  { %2067 = vpow2.f32 %v1189_v52 }
 0x995   :  { %1234 = vrot.lane.b32.xlu0 %v1111_v31, %s2422_s12  ;;  %v1237_v53 = vpop.permute.xlu2 %1236 }
 0x996   :  { %1900 = vmatpush.xpose.msk.msrb.mxu0 %vm463_vm8, %v1237_v53 }
 0x998   :  { %v2068_v54 = vpop.eup %2067 }
 0x999   :  { %v1194_v55 = vsel %vm501_vm10, %v2068_v54, 0.0 }
 0x99a   :  { %1195 = vadd.xlane.f32.xlu1 %v1194_v55 }
 0x99d   :  { %1232 = vrot.lane.b32.xlu0 %v1082_v36, %s2422_s12  ;;  %v1395_v7 = vpop.permute.xlu2 %1394 }
 0x9a5   :  { %1392 = vrot.lane.b32.xlu0 %v1111_v31, %s2423_s13  ;;  %v1522_v18 = vpop.permute.xlu2 %1521 }
 0x9ad   :  { %1517 = vrot.lane.b32.xlu0 %v1079_v35, %s2424_s11  ;;  %v1391_v21 = vpop.permute.xlu2 %1390 }
 0x9b3   :  { %1230 = vrot.lane.b32.xlu1 %v1079_v35, %s2422_s12 }
 0x9bb   :  { %1523 = vrot.lane.b32.xlu1 %v2852_v30, %s2424_s11 }
 0x9c3   :  { %1388 = vrot.lane.b32.xlu1 %v1079_v35, %s2423_s13 }
 0x9cb   :  { %1519 = vrot.lane.b32.xlu1 %v1082_v36, %s2424_s11 }
 0x9f4   :  { %v1193_v62 = vpop.xlane.xlu0 %1192 }
 0x9f5   :  { %2069 = vrcp.f32 %v1193_v62 }
 0x9fb   :  { %v2070_v63 = vpop.eup %2069 }
 0x9fc   :  { %v1199_v1 = vmul.f32 %v2070_v63, %v2066_v48 }
 0x9fe   :  { %1898 = vmatmul.msk.f32.vlgmr.msra.gmra.mxu3 %vm501_vm10, %v1199_v1 }
 0xa07   :  { %v1235_v4 = vpop.permute.xlu0 %1234 }
 0xa08   :  { %1901 = vmatpush.xpose.msk.msrb.mxu0 %vm463_vm8, %v1235_v4 }
 0xa0c   :  { %1910 = vmatpush.xpose.msk.msra.mxu0 %vm463_vm8, %v1395_v7 }
 0xa0d   :  { %v1196_v8 = vpop.xlane.xlu1 %1195 }
 0xa0e   :  { %2071 = vrcp.f32 %v1196_v8 }
 0xa0f   :  { %v1233_v9 = vpop.permute.xlu0 %1232 }
 0xa14   :  { %v2072_v11 = vpop.eup %2071 }
 0xa15   :  { %v1200_v12 = vmul.f32 %v2072_v11, %v2068_v54 }
 0xa17   :  { %v1393_v14 = vpop.permute.xlu0 %1392  ;;  %1899 = vmatmul.msk.f32.gmra.mxu3 %vm501_vm10, %v1200_v12 }
 0xa18   :  { %1911 = vmatpush.xpose.msk.msra.mxu0 %vm463_vm8, %v1393_v14 }
 0xa1f   :  { %v1518_v24 = vpop.permute.xlu0 %1517 }
 0xa25   :  { %v1231_v15 = vpop.permute.xlu1 %1230 }
 0xa26   :  { %1902 = vmatmul.msk.f32.vlgmr.msrb.gmra.mxu0 %vm463_vm8, %v1231_v15 }
 0xa2d   :  { %v1524_v17 = vpop.permute.xlu1 %1523 }
 0xa2e   :  { %1903 = vmatmul.msk.f32.gmra.mxu0 %vm463_vm8, %v1233_v9  ;;  %1918 = vmatpush.xpose.msk.msra.mxu3 %vm463_vm8, %v1524_v17 }
 0xa32   :  { %1919 = vmatpush.xpose.msk.msra.mxu3 %vm463_vm8, %v1522_v18 }
 0xa35   :  { %v1389_v19 = vpop.permute.xlu1 %1388 }
 0xa36   :  { %1912 = vmatmul.msk.f32.vlgmr.msra.gmra.mxu0 %vm463_vm8, %v1389_v19 }
 0xa3d   :  { %v1520_v27 = vpop.permute.xlu1 %1519 }
 0xa3e   :  { %1913 = vmatmul.msk.f32.gmra.mxu0 %vm463_vm8, %v1391_v21 }
 0xa81   :  { %v1224_v22 = vpop.f32.mrf.mxu3 }
 0xa82   :  { %1908 = vmatmul.msk.f32.vlgmr.msrb.gmra.mxu3 %vm463_vm8, %v1224_v22 }
 0xa9a   :  { %v1227_v23 = vpop.f32.mrf.mxu3 }
 0xa9b   :  { %1909 = vmatmul.msk.f32.gmra.mxu3 %vm463_vm8, %v1227_v23 }
 0xaa3   :  { %v1263_v25 = vpop.f32.mrf.mxu0  ;;  %1920 = vmatmul.msk.f32.vlgmr.msra.gmra.mxu3 %vm463_vm8, %v1518_v24 }
 0xaa4   :  { %v1269_v16 = vsel %vm293_vm3, %v1263_v25, -1e+09 }
 0xaa5   :  { %v1271_v26 = vsel %vm501_vm10, %v1269_v16, -inf }
 0xaa6   :  { %1272 = vmax.xlane.f32.xlu0 %v1271_v26 }
 0xaab   :  { %v1266_v28 = vpop.f32.mrf.mxu0  ;;  %1921 = vmatmul.msk.f32.gmra.mxu3 %vm463_vm8, %v1520_v27 }
 0xaac   :  { %v1270_v29 = vsel %vm294_vm4, %v1266_v28, -1e+09 }
 0xaad   :  { %v1274_v30 = vsel %vm501_vm10, %v1270_v29, -inf }
 0xaae   :  { %1275 = vmax.xlane.f32.xlu2 %v1274_v30 }
 0xab3   :  { %v1421_v31 = vpop.f32.mrf.mxu0 }
 0xab4   :  { %v1427_v33 = vsel %vm293_vm3, %v1421_v31, -1e+09 }
 0xab5   :  { %v1429_v34 = vsel %vm501_vm10, %v1427_v33, -inf }
 0xab6   :  { %1430 = vmax.xlane.f32.xlu1 %v1429_v34 }
 0xabb   :  { %v1424_v35 = vpop.f32.mrf.mxu0 }
 0xabc   :  { %v1428_v20 = vsel %vm294_vm4, %v1424_v35, -1e+09 }
 0xabd   :  { %v1432_v36 = vsel %vm501_vm10, %v1428_v20, -inf }
 0xabe   :  { %1433 = vmax.xlane.f32.xlu0 %v1432_v36 }
 0xb05   :  { %v2924_v38 = vpop.f32.mrf.mxu3 }
 0xb19   :  { %v1273_v39 = vpop.xlane.xlu0 %1272 }
 0xb1a   :  { %v1277_v0 = vsub.f32 %v1269_v16, %v1273_v39 }
 0xb1c   :  { %v1279_v41 = vmul.f32 1.442695, %v1277_v0 }
 0xb1e   :  { %2073 = vpow2.f32 %v1279_v41  ;;  %v2926_v42 = vpop.f32.mrf.mxu3 }
 0xb21   :  { %v1276_v6 = vpop.xlane.xlu2 %1275 }
 0xb22   :  { %v1278_v2 = vsub.f32 %v1270_v29, %v1276_v6  ;;  %v1049_v6 = vld [vmem:[#allocation16 + $0x10] sm:$0xff] }
 0xb24   :  { %v2074_v43 = vpop.eup %2073  ;;  %v1281_v49 = vmul.f32 1.442695, %v1278_v2  ;;  %v1050_v2 = vld [vmem:[#allocation16 + $0x18] sm:$0xff] }
 0xb25   :  { %v1283_v44 = vsel %vm501_vm10, %v2074_v43, 0.0 }
 0xb26   :  { %v1550_v45 = vpop.f32.mrf.mxu3  ;;  %1284 = vadd.xlane.f32.xlu0 %v1283_v44 }
 0xb27   :  { %v1556_v46 = vsel %vm293_vm3, %v1550_v45, -1e+09 }
 0xb28   :  { %v1558_v13 = vsel %vm501_vm10, %v1556_v46, -inf }
 0xb29   :  { %v1431_v47 = vpop.xlane.xlu1 %1430  ;;  %1559 = vmax.xlane.f32.xlu2 %v1558_v13 }
 0xb2a   :  { %v1435_v48 = vsub.f32 %v1427_v33, %v1431_v47 }
 0xb2c   :  { %v1437_v50 = vmul.f32 1.442695, %v1435_v48 }
 0xb2e   :  { %2075 = vpow2.f32 %v1437_v50  ;;  %v1553_v51 = vpop.f32.mrf.mxu3 }
 0xb2f   :  { %2077 = vpow2.f32 %v1281_v49  ;;  %v1557_v52 = vsel %vm294_vm4, %v1553_v51, -1e+09 }
 0xb30   :  { %v1561_v53 = vsel %vm501_vm10, %v1557_v52, -inf }
 0xb31   :  { %1562 = vmax.xlane.f32.xlu1 %v1561_v53  ;;  %v1434_v54 = vpop.xlane.xlu0 %1433 }
 0xb32   :  { %v1436_v55 = vsub.f32 %v1428_v20, %v1434_v54  ;;  %v1048_v20 = vld [vmem:[#allocation16 + $0x8] sm:$0xff] }
 0xb33   :  { %1351 = vmatpush.msrb.mxu2 %v1048_v20 }
 0xb34   :  { %v2076_v37 = vpop.eup %2075  ;;  %v1439_v56 = vmul.f32 1.442695, %v1436_v55  ;;  %v2018_v55 = vld [vmem:[%s3027_s0] ss:$0 sm:$0xff] }
 0xb35   :  { %v2078_v57 = vpop.eup %2077  ;;  %v1441_v58 = vsel %vm501_vm10, %v2076_v37, 0.0  ;;  %1507 = vmatpush.msra.mxu2 %v1049_v6 }
 0xb36   :  { %2079 = vpow2.f32 %v1439_v56  ;;  %1442 = vadd.xlane.f32.xlu0 %v1441_v58  ;;  %v1286_v59 = vsel %vm501_vm10, %v2078_v57, 0.0 }
 0xb39   :  { %1287 = vadd.xlane.f32.xlu1 %v1286_v59 }
 0xb3c   :  { %v2080_v60 = vpop.eup %2079 }
 0xb3d   :  { %v1444_v62 = vsel %vm501_vm10, %v2080_v60, 0.0 }
 0xb3e   :  { %1445 = vadd.xlane.f32.xlu0 %v1444_v62 }
 0xb41   :  { %1993 = vrot.lane.b32.xlu2 %v2895_v61, %s2422_s12 }
 0xb49   :  { %2003 = vrot.lane.b32.xlu2 %v2895_v61, %s2424_s11 }
 0xb52   :  { %1998 = vrot.lane.b32.xlu1 %v2895_v61, %s2423_s13 }
 0xb99   :  { %v1285_v40 = vpop.xlane.xlu0 %1284 }
 0xb9a   :  { %2081 = vrcp.f32 %v1285_v40 }
 0xb9c   :  { %v1560_v63 = vpop.xlane.xlu2 %1559 }
 0xb9d   :  { %v1564_v1 = vsub.f32 %v1556_v46, %v1560_v63 }
 0xb9f   :  { %v1566_v3 = vmul.f32 1.442695, %v1564_v1 }
 0xba0   :  { %v2082_v8 = vpop.eup %2081 }
 0xba1   :  { %2083 = vpow2.f32 %v1566_v3  ;;  %v1291_v17 = vmul.f32 %v2082_v8, %v2074_v43 }
 0xba4   :  { %v1563_v4 = vpop.xlane.xlu1 %1562  ;;  %v1994_v7 = vpop.permute.xlu2 %1993 }
 0xba5   :  { %v1565_v9 = vsub.f32 %v1557_v52, %v1563_v4  ;;  %v1995_v11 = vunpack.i.l.bf16 %v1994_v7  ;;  %v1996_v15 = vunpack.i.h.bf16 %v1994_v7 }
 0xba7   :  { %v2084_v12 = vpop.eup %2083  ;;  %v1568_v14 = vmul.f32 1.442695, %v1565_v9  ;;  %1321 = vmatpush.msrb.mxu1 %v1995_v11 }
 0xba8   :  { %v1570_v18 = vsel %vm501_vm10, %v2084_v12, 0.0 }
 0xba9   :  { %2085 = vpow2.f32 %v1568_v14  ;;  %1571 = vadd.xlane.f32.xlu0 %v1570_v18  ;;  %1322 = vmatpush.msrb.mxu1 %v1996_v15  ;;  %v1443_v26 = vpop.xlane.xlu0 %1442  ;;  %v1711_v18 = vld [vmem:[#allocation17 + $0x10] sm:$0xff] }
 0xbaa   :  { %1904 = vmatmul.msk.f32.vlgmr.msrb.gmra.mxu1 %vm501_vm10, %v1291_v17  ;;  %v1712_v17 = vld [vmem:[#allocation17 + $0x18] sm:$0xff] }
 0xbac   :  { %v1288_v61 = vpop.xlane.xlu1 %1287  ;;  %v2004_v19 = vpop.permute.xlu2 %2003 }
 0xbad   :  { %2087 = vrcp.f32 %v1288_v61  ;;  %v2005_v21 = vunpack.i.l.bf16 %v2004_v19  ;;  %v2006_v23 = vunpack.i.h.bf16 %v2004_v19  ;;  %v1710_v61 = vld [vmem:[#allocation17 + $0x8] sm:$0xff]  ;;  %v1709_v19 = vld [vmem:[#allocation17] sm:$0xff] }
 0xbae   :  { %2089 = vrcp.f32 %v1443_v26 }
 0xbaf   :  { %v2086_v22 = vpop.eup %2085  ;;  %1606 = vmatpush.msrb.mxu0 %v2005_v21 }
 0xbb0   :  { %v1573_v24 = vsel %vm501_vm10, %v2086_v22, 0.0 }
 0xbb1   :  { %1574 = vadd.xlane.f32.xlu0 %v1573_v24  ;;  %1607 = vmatpush.msrb.mxu0 %v2006_v23  ;;  %v1446_v27 = vpop.xlane.xlu0 %1445  ;;  %v1755_v24 = vld [vmem:[%s2574_s6 + $0x38] sm:$0xff] }
 0xbb2   :  { %2091 = vrcp.f32 %v1446_v27  ;;  %1771 = vmatpush.msrb.mxu3 %v1755_v24 }
 0xbb3   :  { %v2088_v25 = vpop.eup %2087 }
 0xbb4   :  { %v1292_v16 = vmul.f32 %v2088_v25, %v2078_v57  ;;  %v2090_v29 = vpop.eup %2089  ;;  %v1754_v25 = vld [vmem:[%s2574_s6 + $0x30] sm:$0xff] }
 0xbb5   :  { %v1449_v33 = vmul.f32 %v2090_v29, %v2076_v37  ;;  %1772 = vmatpush.msrb.mxu3 %v1754_v25 }
 0xbb6   :  { %1905 = vmatmul.msk.f32.gmra.mxu1 %vm501_vm10, %v1292_v16  ;;  %v1753_v16 = vld [vmem:[%s2574_s6 + $0x28] sm:$0xff] }
 0xbb7   :  { %1773 = vmatpush.msrb.mxu3 %v1753_v16 }
 0xbb8   :  { %v2092_v34 = vpop.eup %2091 }
 0xbb9   :  { %v1450_v35 = vmul.f32 %v2092_v34, %v2080_v60  ;;  %v1750_v34 = vld [vmem:[%s2574_s6 + $0x10] sm:$0xff] }
 0xbc4   :  { %v1999_v28 = vpop.permute.xlu1 %1998 }
 0xbc5   :  { %v2000_v30 = vunpack.i.l.bf16 %v1999_v28  ;;  %v2001_v31 = vunpack.i.h.bf16 %v1999_v28  ;;  %v1752_v28 = vld [vmem:[%s2574_s6 + $0x20] sm:$0xff] }
 0xbc6   :  { %1774 = vmatpush.msrb.mxu3 %v1752_v28 }
 0xbc7   :  { %1477 = vmatpush.msra.mxu1 %v2000_v30 }
 0xbc9   :  { %1478 = vmatpush.msra.mxu1 %v2001_v31  ;;  %v1751_v31 = vld [vmem:[%s2574_s6 + $0x18] sm:$0xff] }
 0xbca   :  { %1914 = vmatmul.msk.f32.vlgmr.msra.gmra.mxu1 %vm501_vm10, %v1449_v33  ;;  %1775 = vmatpush.msrb.mxu3 %v1751_v31 }
 0xbcb   :  { %1636 = vmatpush.msrb.mxu1 %v1050_v2 }
 0xbcc   :  { %1776 = vmatpush.msrb.mxu3 %v1750_v34 }
 0xbd2   :  { %1915 = vmatmul.msk.f32.gmra.mxu1 %vm501_vm10, %v1450_v35 }
 0xc1c   :  { %v1572_v36 = vpop.xlane.xlu0 %1571 }
 0xc1d   :  { %2093 = vrcp.f32 %v1572_v36 }
 0xc23   :  { %v2094_v39 = vpop.eup %2093 }
 0xc24   :  { %v1578_v0 = vmul.f32 %v2094_v39, %v2084_v12  ;;  %v1575_v41 = vpop.xlane.xlu0 %1574 }
 0xc25   :  { %2095 = vrcp.f32 %v1575_v41  ;;  %v2019_v41 = vld [vmem:[%s3028_s15] ss:$0 sm:$0xff] }
 0xc26   :  { %1922 = vmatmul.msk.f32.vlgmr.msrb.gmra.mxu0 %vm501_vm10, %v1578_v0 }
 0xc27   :  { %v1324_v43 = vpop.f32.mrf.mxu1 }
 0xc28   :  { %1906 = vmatmul.msk.f32.vlgmr.msrb.gmra.mxu2 %vm463_vm8, %v1324_v43 }
 0xc29   :  { %1735 = vmatpush.msrb.mxu2 %v1712_v17 }
 0xc2b   :  { %v2096_v44 = vpop.eup %2095  ;;  %1736 = vmatpush.msrb.mxu2 %v1711_v18 }
 0xc2c   :  { %v1579_v45 = vmul.f32 %v2096_v44, %v2086_v22 }
 0xc2d   :  { %1737 = vmatpush.msrb.mxu2 %v1710_v61 }
 0xc2e   :  { %1923 = vmatmul.msk.f32.gmra.mxu0 %vm501_vm10, %v1579_v45  ;;  %v2020_v45 = vld [vmem:[%s3029_s17] ss:$0 sm:$0xff] }
 0xc2f   :  { %1738 = vmatpush.msrb.mxu2 %v1709_v19 }
 0xc33   :  { %v1327_v46 = vpop.f32.mrf.mxu1 }
 0xc34   :  { %1907 = vmatmul.msk.f32.gmra.mxu2 %vm463_vm8, %v1327_v46 }
 0xc47   :  { %v1480_v13 = vpop.f32.mrf.mxu1 }
 0xc48   :  { %1916 = vmatmul.msk.f32.vlgmr.msra.gmra.mxu2 %vm463_vm8, %v1480_v13 }
 0xc4f   :  { %v1483_v47 = vpop.f32.mrf.mxu1 }
 0xc50   :  { %1917 = vmatmul.msk.f32.gmra.mxu2 %vm463_vm8, %v1483_v47 }
 0xca3   :  { %v1609_v48 = vpop.f32.mrf.mxu0 }
 0xca4   :  { %1924 = vmatmul.msk.f32.vlgmr.msrb.gmra.mxu1 %vm463_vm8, %v1609_v48 }
 0xcab   :  { %v1612_v49 = vpop.f32.mrf.mxu0  ;;  %v1353_v50 = vpop.f32.mrf.mxu2 }
 0xcac   :  { %1925 = vmatmul.msk.f32.gmra.mxu1 %vm463_vm8, %v1612_v49  ;;  %v1383_v53 = vadd.f32 %v2924_v38, %v1353_v50 }
 0xcb7   :  { %v1356_v51 = vpop.f32.mrf.mxu2 }
 0xcb8   :  { %v1386_v59 = vadd.f32 %v2926_v42, %v1356_v51 }
 0xccb   :  { %v1509_v52 = vpop.f32.mrf.mxu2 }
 0xccc   :  { %v1515_v54 = vadd.f32 %v1509_v52, %v1383_v53  ;;  %v1749_v53 = vld [vmem:[%s2574_s6 + $0x8] sm:$0xff] }
 0xccd   :  { %1777 = vmatpush.msrb.mxu3 %v1749_v53 }
 0xcd3   :  { %v1512_v58 = vpop.f32.mrf.mxu2 }
 0xcd4   :  { %v1516_v62 = vadd.f32 %v1512_v58, %v1386_v59 }
 0xd21   :  { %v1638_v37 = vpop.f32.mrf.mxu1 }
 0xd22   :  { %v1644_v56 = vadd.f32 %v1638_v37, %v1515_v54  ;;  %v1748_v54 = vld [vmem:[%s2574_s6] sm:$0xff] }
 0xd23   :  { %1778 = vmatpush.msrb.mxu3 %v1748_v54 }
 0xd24   :  { %v1649_v57 = vadd.f32 %v2018_v55, %v1644_v56 }
 0xd26   :  { %v2962_v60 = vadd.f32 %v1649_v57, %v2821_v32 }
 0xd28   :  { %v1655_v40 = vsel %vm297_vm0, %v2962_v60, 0.0 }
 0xd29   :  { %v1641_v63 = vpop.f32.mrf.mxu1  ;;  %1656 = vadd.xlane.f32.xlu2 %v1655_v40  ;;  %v2022_v40 = vld [vmem:[%s2579_s29] ss:$0 sm:$0xff]  ;;  %s2353_s29 = sshra.s32 %s1803_s26, 4  ;;  %s2354_s29 = int_to_ptr.hbm [resolvable:$true] %s2353_s29 }
 0xd2a   :  { %v1645_v1 = vadd.f32 %v1641_v63, %v1516_v62  ;;  %s2355_s3 = scalar_lea.hbm %s2354_s29, 16  ;;  %p2358_p9 = scmp.lt.s32.totalorder %s2354_s29, %s2584_s25 }
 0xd2b   :  { %p2356_p8 = scmp.ne.s32.totalorder %s2354_s29, %s2355_s3  ;;  %p2359_p10 = scmp.lt.s32.totalorder %s2357_s5, %s2355_s3 }
 0xd2c   :  { %v1650_v3 = vadd.f32 %v2018_v55, %v1645_v1  ;;  %v2021_v55 = vld [vmem:[%s2569_s8] ss:$0 sm:$0xff]  ;;  %s2425_s8 = smov [#allocation19]  }
 0xd2d   :  { %s1800_s6 = sshll.u32 %s2425_s8, 4  ;;  %p2360_p11 = por %p2359_p10, %p2358_p9  ;;  %s1801_s6 = int_to_ptr.vmem [resolvable:$true] %s1800_s6 }
 0xd2e   :  { %v2967_v38 = vadd.f32 %v1650_v3, %v2827_v5 }
 0xd2f   :  { %p2361_p12 = pnand %p2360_p11, %p2356_p8 }
 0xd30   :  { %v1658_v4 = vsel %vm297_vm0, %v2967_v38, 0.0 }
 0xd31   :  { %1659 = vadd.xlane.f32.xlu0 %v1658_v4 }
 0xd9c   :  { %v1657_v7 = vpop.xlane.xlu2 %1656 }
 0xd9d   :  { %v1661_v42 = vmul.f32 %v1657_v7, %v2686_v10 }
 0xd9f   :  { %v1663_v32 = vsub.f32 %v2962_v60, %v1661_v42 }
 0xda1   :  { %v1665_v8 = vmul.f32 %v1663_v32, %v1663_v32 }
 0xda3   :  { %v1667_v9 = vsel %vm297_vm0, %v1665_v8, 0.0 }
 0xda4   :  { %1668 = vadd.xlane.f32.xlu1 %v1667_v9  ;;  %v1660_v11 = vpop.xlane.xlu0 %1659 }
 0xda5   :  { %v1662_v12 = vmul.f32 %v1660_v11, %v2686_v10 }
 0xda7   :  { %v1664_v14 = vsub.f32 %v2967_v38, %v1662_v12 }
 0xda9   :  { %v1666_v5 = vmul.f32 %v1664_v14, %v1664_v14 }
 0xdab   :  { %v1670_v15 = vsel %vm297_vm0, %v1666_v5, 0.0 }
 0xdac   :  { %1671 = vadd.xlane.f32.xlu0 %v1670_v15 }
 0xe17   :  { %v1669_v21 = vpop.xlane.xlu1 %1668 }
 0xe18   :  { %v1673_v22 = vmul.f32 %v1669_v21, %v2686_v10 }
 0xe1a   :  { %v1675_v23 = vadd.f32 1e-05, %v1673_v22 }
 0xe1c   :  { %2097 = vrsqrt.f32 %v1675_v23  ;;  %vm1683_vm6 = vweird.f32 %v1675_v23 }
 0xe1f   :  { %v1672_v26 = vpop.xlane.xlu0 %1671 }
 0xe20   :  { %v1674_v27 = vmul.f32 %v1672_v26, %v2686_v10 }
 0xe22   :  { %v2098_v29 = vpop.eup %2097  ;;  %v1676_v30 = vadd.f32 1e-05, %v1674_v27 }
 0xe23   :  { %v1678_v33 = vmul.f32 %v2098_v29, %v1675_v23  ;;  %vm1684_vm5 = vweird.f32 %v2098_v29 }
 0xe24   :  { %2099 = vrsqrt.f32 %v1676_v30  ;;  %vm1685_vm7 = vmor %vm1683_vm6, %vm1684_vm5  ;;  %vm1693_vm9 = vweird.f32 %v1676_v30 }
 0xe25   :  { %v1679_v35 = vmul.f32 %v2098_v29, %v1678_v33 }
 0xe27   :  { %v1680_v20 = vmul.f32 0.5, %v1679_v35 }
 0xe29   :  { %v1681_v36 = vsub.f32 1.5, %v1680_v20 }
 0xe2a   :  { %v2100_v39 = vpop.eup %2099 }
 0xe2b   :  { %v1682_v0 = vmul.f32 %v2098_v29, %v1681_v36  ;;  %v1688_v10 = vmul.f32 %v2100_v39, %v1676_v30  ;;  %vm1694_vm8 = vweird.f32 %v2100_v39 }
 0xe2c   :  { %vm1695_vm10 = vmor %vm1693_vm9, %vm1694_vm8 }
 0xe2d   :  { %v1686_v43 = vsel %vm1685_vm7, %v2098_v29, %v1682_v0  ;;  %v1689_v6 = vmul.f32 %v2100_v39, %v1688_v10 }
 0xe2e   :  { %v1697_v44 = vmul.f32 %v1686_v43, %v1663_v32 }
 0xe2f   :  { %v1690_v2 = vmul.f32 0.5, %v1689_v6 }
 0xe30   :  { %v1702_v46 = vmul.f32 %v2019_v41, %v1697_v44 }
 0xe31   :  { %v1691_v13 = vsub.f32 1.5, %v1690_v2 }
 0xe32   :  { %v1707_v47 = vadd.f32 %v2020_v45, %v1702_v46 }
 0xe33   :  { %v1692_v48 = vmul.f32 %v2100_v39, %v1691_v13 }
 0xe34   :  { %1926 = vmatmul.msk.f32.vlgmr.msrb.gmra.mxu2 %vm297_vm0, %v1707_v47 }
 0xe35   :  { %v1696_v49 = vsel %vm1695_vm10, %v2100_v39, %v1692_v48 }
 0xe36   :  { %v1698_v50 = vmul.f32 %v1696_v49, %v1664_v14 }
 0xe38   :  { %v1703_v51 = vmul.f32 %v2019_v41, %v1698_v50 }
 0xe3a   :  { %v1708_v52 = vadd.f32 %v2020_v45, %v1703_v51 }
 0xe3c   :  { %1927 = vmatmul.msk.f32.gmra.mxu2 %vm297_vm0, %v1708_v52 }
 0xeb7   :  { %v1740_v37 = vpop.f32.mrf.mxu2 }
 0xeb8   :  { %v1741_v56 = vadd.f32 %v2021_v55, %v1740_v37 }
 0xeba   :  { %v1746_v57 = vmax.f32 %v1741_v56, 0.0 }
 0xebc   :  { %1928 = vmatmul.msk.f32.vlgmr.msrb.gmra.mxu3 %vm1756_vm11, %v1746_v57 }
 0xebf   :  { %v1743_v58 = vpop.f32.mrf.mxu2 }
 0xec0   :  { %v1744_v59 = vadd.f32 %v2021_v55, %v1743_v58 }
 0xec2   :  { %v1747_v62 = vmax.f32 %v1744_v59, 0.0 }
 0xec4   :  { %1929 = vmatmul.msk.f32.gmra.mxu3 %vm1756_vm11, %v1747_v62 }
 0xf3f   :  { %v1780_v63 = vpop.f32.mrf.mxu3 }
 0xf40   :  { %v1786_v1 = vadd.f32 %v1780_v63, %v2962_v60 }
 0xf42   :  { %v1792_v3 = vadd.f32 %v2022_v40, %v1786_v1 }
 0xf44   :  { %1794 = vst.msk [vmem:[#allocation19] sm:$0xff] %vm297_vm0, %v1792_v3 }
 0xf47   :  { %v1783_v4 = vpop.f32.mrf.mxu3 }
 0xf48   :  { %v1787_v7 = vadd.f32 %v1783_v4, %v2967_v38 }
 0xf4a   :  { %v1793_v42 = vadd.f32 %v2022_v40, %v1787_v7 }
 0xf4c   :  { %1795 = vst.msk [vmem:[#allocation19 + $0x8] sm:$0xff] %vm297_vm0, %v1793_v42 }
 0xf4d   :  { %2364 = shalt.err (!%p2361_p12)
}
 0xf4e   :  { %1808 = dma.vmem_to_hbm [thread:$0]  %s1801_s6, 256, %s1803_s26, [#allocation4], %s2410_s28, %s2410_s28, %s2411_s1  }
 0xf4f   :  { %2377 = dma.done.wait [#allocation4], 256  }
 0xf50   :  { %2378 = vsyncadd [#allocation4], 4294967040 }
 0xf51   :  { %1813 = vsyncpa [#allocation3], 1 }
 0xf52   :  { %1814 = vsyncpa [#allocation6], 1 }
 0xf53   :  { %1815 = vsyncpa [#allocation9], 1 }
 0xf54   :  { %1816 = vsyncpa [#allocation12], 1 }
 0xf55   :  { %1817 = vsyncpa [#allocation15], 1 }
 0xf56   :  { %1818 = vsyncpa [#allocation18], 1 }
 0xf57   :  { %1819 = vsyncpa [#allocation4], 1 }

</bundles_post_ra>
